<compile_context>
chip_gen: v7x
topology: tpu7x:2x2x1
jax: 0.10.0
libtpu: 0.0.40
codegen_flags: <defaults>
</compile_context>

<pallas_src>
import numpy as np
import jax
import jax.numpy as jnp
from jax.experimental import pallas as pl
from jax.experimental.pallas import tpu as pltpu


def _softplus(x):
    # matches torch.nn.functional.softplus(beta=1, threshold=20)
    return jnp.where(x > 20.0, x, jnp.log1p(jnp.exp(jnp.minimum(x, 20.0))))


def _round_up(x, m):
    return (x + m - 1) // m * m


def _net_kernel(alpha_ref,
                x_ref, w0_ref, w1_ref, w2_ref, w3_ref, sel_ref,
                b0_ref, b1_ref, b2_ref, b3_ref, lo_ref, hi_ref,
                tm_ref, be_ref,
                evox_ref, adcp_ref, pu_ref):
    """One batch tile, fully in the interleaved (V voxels x N features) layout."""
    f32, bf16 = jnp.float32, jnp.bfloat16

    def prelu(h, a):                                   # nn.PReLU, scalar slope
        return jnp.where(h >= 0.0, h, a * h)

    x = x_ref[...]                                     # (R, 128) f32

    # encoder: 3 x [Linear(N,N), PReLU] + Linear(N, nparams) as block-diagonal
    # 128-deep matmuls; bf16 MXU inputs, f32 accumulation.
    h = jnp.dot(x.astype(bf16), w0_ref[...], preferred_element_type=f32) + b0_ref[...]
    h = prelu(h, alpha_ref[0])
    h = jnp.dot(h.astype(bf16), w1_ref[...], preferred_element_type=f32) + b1_ref[...]
    h = prelu(h, alpha_ref[1])
    h = jnp.dot(h.astype(bf16), w2_ref[...], preferred_element_type=f32) + b2_ref[...]
    h = prelu(h, alpha_ref[2])
    logits = jnp.dot(h.astype(bf16), w3_ref[...], preferred_element_type=f32) + b3_ref[...]

    params = _softplus(logits)                          # (R, V*4) unclamped, compact
    clamped = jnp.clip(params, lo_ref[...], hi_ref[...])

    # Broadcast the clamped per-voxel params across each voxel's N feature
    # lanes with a 0/1 selector matmul.  The hi+lo bf16 split keeps the f32
    # values essentially exact through the bf16 MXU.
    hi = clamped.astype(bf16)
    lo = (clamped - hi.astype(f32)).astype(bf16)
    sel = sel_ref[...]                                  # (V*4, 3*128), 0/1
    bc = (jnp.dot(hi, sel, preferred_element_type=f32)
          + jnp.dot(lo, sel, preferred_element_type=f32))   # (R, 3*128)
    adc = bc[:, 0:128]
    sig = bc[:, 128:256]
    axr = bc[:, 256:384]

    tm = tm_ref[...]                                    # (1, 128); may hold +inf
    be = be_ref[...]
    # exp(-inf * axr) == 0 because axr is clamped to limits[2,0] > 0, exactly
    # as in the PyTorch forward (no special-casing of inf).
    adcp = adc * (1.0 - sig * jnp.exp(-tm * axr))       # (R, 128), lane dense
    evox_ref[...] = jnp.exp(-adcp * be)
    adcp_ref[...] = adcp
    pu_ref[...] = params                                # unclamped params (compact)


def net_forward(x, weights, tm, be, limits, *, block_rows=16384):
    """Pallas forward pass of Net.

    x:       (B, N) float32, N = len(be).
    weights: (w0, b0, w1, b1, w2, b2, w3, b3, alphas) in PyTorch layout
             (wX is (out_features, in_features); alphas = 3 scalar PReLU slopes).
    tm, be:  (N,) acquisition vectors (tm may contain +inf from __init__).
    limits:  (3, 2) clamp table (limits[2,0] > 0 keeps exp(-inf*axr) == 0).
    Returns the same 8 tensors as Net.forward, in the same order.
    """
    B, N = x.shape
    NP = 3
    assert 128 % N == 0 and N >= 8, "interleaved layout assumes len(be) divides 128"
    # TODO(synk): generalize to N that does not divide 128 (feature padding).
    V = 128 // N                 # voxels per 128-lane row
    NPP = NP + 1                 # pad params to 4 lanes/voxel (MXU-friendly widths)

    (w0, b0, w1, b1, w2, b2, w3, b3, alphas) = weights
    f32, bf16 = jnp.float32, jnp.bfloat16

    # ---- batch tiling: >=2 grid steps when possible (v7x dual-TC) ----------
    assert block_rows % 128 == 0
    tb = min(block_rows, max(128, _round_up(pl.cdiv(B, 2), 128)))
    bp = _round_up(B, tb)
    xp = x if bp == B else jnp.pad(x, ((0, bp - B), (0, 0)))
    x_int = xp.reshape(bp // V, 128)                    # free: bit-identical memory
    grid = (bp // tb,)
    R = tb // V                                         # block rows, interleaved

    # ---- constant operands in interleaved layouts (built once, tiny) -------
    eyeV = jnp.eye(V, dtype=f32)
    w0b = jnp.kron(eyeV, w0.T).astype(bf16)             # (128, 128) block-diagonal
    w1b = jnp.kron(eyeV, w1.T).astype(bf16)
    w2b = jnp.kron(eyeV, w2.T).astype(bf16)
    w3p = jnp.concatenate([w3.T, jnp.zeros((N, NPP - NP), f32)], axis=1)
    w3b = jnp.kron(eyeV, w3p).astype(bf16)              # (128, V*4)

    b0t = jnp.tile(b0, V).reshape(1, 128)
    b1t = jnp.tile(b1, V).reshape(1, 128)
    b2t = jnp.tile(b2, V).reshape(1, 128)
    b3p = jnp.concatenate([b3, jnp.zeros((NPP - NP,), f32)])
    b3t = jnp.tile(b3p, V).reshape(1, V * NPP)

    lop = jnp.concatenate([limits[:, 0], jnp.zeros((NPP - NP,), f32)])
    hip = jnp.concatenate([limits[:, 1], jnp.ones((NPP - NP,), f32)])
    lo_c = jnp.tile(lop, V).reshape(1, V * NPP)
    hi_c = jnp.tile(hip, V).reshape(1, V * NPP)

    tm_t = jnp.tile(tm, V).reshape(1, 128)
    be_t = jnp.tile(be, V).reshape(1, 128)

    # 0/1 selector: compact (V*NPP) param lanes -> 3 broadcast 128-lane planes.
    sel_np = np.zeros((V * NPP, NP * 128), np.float32)
    for p in range(NP):
        for k in range(V):
            sel_np[NPP * k + p, 128 * p + N * k: 128 * p + N * (k + 1)] = 1.0
    sel = jnp.asarray(sel_np, bf16)

    # ---- pallas_call --------------------------------------------------------
    smem = pl.BlockSpec(memory_space=pltpu.MemorySpace.SMEM)

    def resident(shape):        # whole array, VMEM-resident across grid steps
        return pl.BlockSpec(shape, lambda i: (0, 0))

    in_specs = [
        smem,                                                    # alphas
        pl.BlockSpec((R, 128), lambda i: (i, 0)),                # x (interleaved)
        resident((128, 128)), resident((128, 128)), resident((128, 128)),
        resident((128, V * NPP)), resident((V * NPP, NP * 128)),
        resident((1, 128)), resident((1, 128)), resident((1, 128)),
        resident((1, V * NPP)), resident((1, V * NPP)), resident((1, V * NPP)),
        resident((1, 128)), resident((1, 128)),
    ]
    out_specs = (
        pl.BlockSpec((R, 128), lambda i: (i, 0)),                # E_vox
        pl.BlockSpec((R, 128), lambda i: (i, 0)),                # adc_prime
        pl.BlockSpec((R, V * NPP), lambda i: (i, 0)),            # unclamped params
    )
    out_shape = (
        jax.ShapeDtypeStruct((bp // V, 128), f32),
        jax.ShapeDtypeStruct((bp // V, 128), f32),
        jax.ShapeDtypeStruct((bp // V, V * NPP), f32),
    )

    cost = pl.CostEstimate(
        flops=(bp // V) * 2 * (3 * 128 * 128 + 128 * V * NPP + 2 * V * NPP * NP * 128),
        transcendentals=bp * (2 * NPP + 2 * N),
        bytes_accessed=bp * 4 * (N + 2 * N + NPP),
    )

    evox_i, adcp_i, pu_i = pl.pallas_call(
        _net_kernel,
        grid=grid,
        in_specs=in_specs,
        out_specs=out_specs,
        out_shape=out_shape,
        compiler_params=pltpu.CompilerParams(
            dimension_semantics=("parallel",),   # shard batch tiles across TCs on v7x
            vmem_limit_bytes=32 * 1024 * 1024,
        ),
        cost_estimate=cost,
    )(alphas, x_int, w0b, w1b, w2b, w3b, sel,
      b0t, b1t, b2t, b3t, lo_c, hi_c, tm_t, be_t)

    # Free reshapes back to batch-major memory, then drop the padding rows.
    evox = evox_i.reshape(bp, N)[:B]
    adcp = adcp_i.reshape(bp, N)[:B]
    pu = pu_i.reshape(bp, NPP)[:B]
    adc_u, sig_u, axr_u = pu[:, 0:1], pu[:, 1:2], pu[:, 2:3]
    adc = jnp.clip(adc_u, limits[0, 0], limits[0, 1])
    sig = jnp.clip(sig_u, limits[1, 0], limits[1, 1])
    axr = jnp.clip(axr_u, limits[2, 0], limits[2, 1])
    return (evox, adcp, adc, sig, axr, axr_u, adc_u, sig_u)


if __name__ == "__main__":
    B, N, NP = 512, 16, 3
    key = jax.random.PRNGKey(0)
    keys = jax.random.split(key, 6)

    # Deterministic acquisition parameters (synthetic, consistent with the module).
    be = jnp.linspace(0.0, 2.5, N).astype(jnp.float32)
    bf = jnp.asarray([0.0, 1.0] * (N // 2), jnp.float32)
    tm_raw = jnp.concatenate(
        [jnp.full((N // 2,), 0.05), jnp.linspace(0.05, 0.8, N // 2)]).astype(jnp.float32)
    # Net.__init__ semantics: tm[(tm == tm.min()) & (bf == 0)] = inf
    tm = jnp.where((tm_raw == tm_raw.min()) & (bf == 0.0), jnp.inf, tm_raw)
    limits = jnp.asarray([[0.1, 3.5], [0.0, 1.0], [1.0, 20.0]], jnp.float32)

    # Deterministic Linear params (PyTorch default uniform(-1/sqrt(fan_in), ...)).
    def lin(k, fan_in, fan_out):
        bound = float(1.0 / np.sqrt(fan_in))
        kw, kb = jax.random.split(k)
        w = jax.random.uniform(kw, (fan_out, fan_in), jnp.float32, -bound, bound)
        b = jax.random.uniform(kb, (fan_out,), jnp.float32, -bound, bound)
        return w, b

    w0, b0 = lin(keys[0], N, N)
    w1, b1 = lin(keys[1], N, N)
    w2, b2 = lin(keys[2], N, N)
    w3, b3 = lin(keys[3], N, NP)
    alphas = jnp.full((3,), 0.25, jnp.float32)           # nn.PReLU default init

    x = jax.random.uniform(keys[4], (B, N), jnp.float32, 0.0, 1.0)   # adc_prime input

    weights = (w0, b0, w1, b1, w2, b2, w3, b3, alphas)
    outs = jax.block_until_ready(net_forward(x, weights, tm, be, limits))

    # Pure-JAX f32 reference of the PyTorch forward pass.
    hp = jax.lax.Precision.HIGHEST

    def ref_forward(xx):
        def prelu(h, a):
            return jnp.where(h >= 0, h, a * h)
        h = prelu(jnp.dot(xx, w0.T, precision=hp) + b0, alphas[0])
        h = prelu(jnp.dot(h, w1.T, precision=hp) + b1, alphas[1])
        h = prelu(jnp.dot(h, w2.T, precision=hp) + b2, alphas[2])
        p = jax.nn.softplus(jnp.dot(h, w3.T, precision=hp) + b3)
        adc_u, sig_u, axr_u = p[:, 0:1], p[:, 1:2], p[:, 2:3]
        adc = jnp.clip(adc_u, limits[0, 0], limits[0, 1])
        sig = jnp.clip(sig_u, limits[1, 0], limits[1, 1])
        axr = jnp.clip(axr_u, limits[2, 0], limits[2, 1])
        adcp = adc * (1.0 - sig * jnp.exp(-tm[None, :] * axr))
        evox = jnp.exp(-adcp * be[None, :])
        return (evox, adcp, adc, sig, axr, axr_u, adc_u, sig_u)

    refs = ref_forward(x)
    names = ["E_vox", "adc_prime", "adc", "sigma", "axr",
             "axr_unclamped", "adc_unclamped", "sigma_unclamped"]
    for nm, o, r in zip(names, outs, refs):
        assert o.shape == r.shape, (nm, o.shape, r.shape)
        # bf16 MXU matmuls (f32 accumulation) -> tolerance loosened vs f32 reference.
        assert jnp.allclose(o, r, atol=2e-2, rtol=5e-2), (
            nm, float(jnp.max(jnp.abs(o - r))))

    print("KERNEL_OK")
</pallas_src>

<mosaic_0001>
module attributes {stable_mosaic.version = 11 : i64} {
  func.func @_net_kernel(%arg0: i32, %arg1: memref<3xf32, #tpu.memory_space<smem>>, %arg2: memref<32x128xf32, #tpu.memory_space<vmem>>, %arg3: memref<128x128xbf16, #tpu.memory_space<vmem>>, %arg4: memref<128x128xbf16, #tpu.memory_space<vmem>>, %arg5: memref<128x128xbf16, #tpu.memory_space<vmem>>, %arg6: memref<128x32xbf16, #tpu.memory_space<vmem>>, %arg7: memref<32x384xbf16, #tpu.memory_space<vmem>>, %arg8: memref<1x128xf32, #tpu.memory_space<vmem>>, %arg9: memref<1x128xf32, #tpu.memory_space<vmem>>, %arg10: memref<1x128xf32, #tpu.memory_space<vmem>>, %arg11: memref<1x32xf32, #tpu.memory_space<vmem>>, %arg12: memref<1x32xf32, #tpu.memory_space<vmem>>, %arg13: memref<1x32xf32, #tpu.memory_space<vmem>>, %arg14: memref<1x128xf32, #tpu.memory_space<vmem>>, %arg15: memref<1x128xf32, #tpu.memory_space<vmem>>, %arg16: memref<32x128xf32, #tpu.memory_space<vmem>>, %arg17: memref<32x128xf32, #tpu.memory_space<vmem>>, %arg18: memref<32x32xf32, #tpu.memory_space<vmem>>) attributes {dimension_semantics = [#tpu.dimension_semantics<parallel>], iteration_bounds = array<i64: 2>, scalar_prefetch = 0 : i64, scratch_operands = 0 : i64, tpu.core_type = #tpu.core_type<tc>, window_params = [{transform_indices = @transform_0, window_bounds = array<i64: 3>}, {transform_indices = @transform_1, window_bounds = array<i64: 32, 128>}, {pipeline_mode = #tpu.pipeline_mode<synchronous>, transform_indices = @transform_2, window_bounds = array<i64: 128, 128>}, {pipeline_mode = #tpu.pipeline_mode<synchronous>, transform_indices = @transform_3, window_bounds = array<i64: 128, 128>}, {pipeline_mode = #tpu.pipeline_mode<synchronous>, transform_indices = @transform_4, window_bounds = array<i64: 128, 128>}, {pipeline_mode = #tpu.pipeline_mode<synchronous>, transform_indices = @transform_5, window_bounds = array<i64: 128, 32>}, {pipeline_mode = #tpu.pipeline_mode<synchronous>, transform_indices = @transform_6, window_bounds = array<i64: 32, 384>}, {pipeline_mode = #tpu.pipeline_mode<synchronous>, transform_indices = @transform_7, window_bounds = array<i64: 1, 128>}, {pipeline_mode = #tpu.pipeline_mode<synchronous>, transform_indices = @transform_8, window_bounds = array<i64: 1, 128>}, {pipeline_mode = #tpu.pipeline_mode<synchronous>, transform_indices = @transform_9, window_bounds = array<i64: 1, 128>}, {pipeline_mode = #tpu.pipeline_mode<synchronous>, transform_indices = @transform_10, window_bounds = array<i64: 1, 32>}, {pipeline_mode = #tpu.pipeline_mode<synchronous>, transform_indices = @transform_11, window_bounds = array<i64: 1, 32>}, {pipeline_mode = #tpu.pipeline_mode<synchronous>, transform_indices = @transform_12, window_bounds = array<i64: 1, 32>}, {pipeline_mode = #tpu.pipeline_mode<synchronous>, transform_indices = @transform_13, window_bounds = array<i64: 1, 128>}, {pipeline_mode = #tpu.pipeline_mode<synchronous>, transform_indices = @transform_14, window_bounds = array<i64: 1, 128>}, {transform_indices = @transform_15, window_bounds = array<i64: 32, 128>}, {transform_indices = @transform_16, window_bounds = array<i64: 32, 128>}, {transform_indices = @transform_17, window_bounds = array<i64: 32, 32>}]} {
    %c0 = arith.constant 0 : index
    %c0_0 = arith.constant 0 : index
    %0 = vector.load %arg2[%c0, %c0_0] : memref<32x128xf32, #tpu.memory_space<vmem>>, vector<32x128xf32>
    %1 = arith.truncf %0 : vector<32x128xf32> to vector<32x128xbf16>
    %c0_1 = arith.constant 0 : index
    %c0_2 = arith.constant 0 : index
    %2 = vector.load %arg3[%c0_1, %c0_2] : memref<128x128xbf16, #tpu.memory_space<vmem>>, vector<128x128xbf16>
    %cst = arith.constant dense<0.000000e+00> : vector<32x128xf32>
    %3 = tpu.matmul %1, %2, %cst {dimension_numbers = #tpu.dot_dimension_numbers<[1], [0], [0], [1], [0, 0, 1, 1], [], []>} : vector<32x128xbf16>, vector<128x128xbf16>, vector<32x128xf32> -> vector<32x128xf32>
    %c0_3 = arith.constant 0 : index
    %c0_4 = arith.constant 0 : index
    %4 = vector.load %arg8[%c0_3, %c0_4] : memref<1x128xf32, #tpu.memory_space<vmem>>, vector<1x128xf32>
    %5 = vector.broadcast %4 : vector<1x128xf32> to vector<32x128xf32>
    %6 = arith.addf %3, %5 : vector<32x128xf32>
    %c0_5 = arith.constant 0 : index
    %7 = memref.load %arg1[%c0_5] : memref<3xf32, #tpu.memory_space<smem>>
    %cst_6 = arith.constant 0.000000e+00 : f32
    %8 = vector.broadcast %cst_6 : f32 to vector<32x128xf32>
    %9 = arith.cmpf oge, %6, %8 : vector<32x128xf32>
    %10 = vector.broadcast %7 : f32 to vector<32x128xf32>
    %11 = arith.mulf %10, %6 : vector<32x128xf32>
    %12 = arith.select %9, %6, %11 : vector<32x128xi1>, vector<32x128xf32>
    %13 = arith.truncf %12 : vector<32x128xf32> to vector<32x128xbf16>
    %c0_7 = arith.constant 0 : index
    %c0_8 = arith.constant 0 : index
    %14 = vector.load %arg4[%c0_7, %c0_8] : memref<128x128xbf16, #tpu.memory_space<vmem>>, vector<128x128xbf16>
    %cst_9 = arith.constant dense<0.000000e+00> : vector<32x128xf32>
    %15 = tpu.matmul %13, %14, %cst_9 {dimension_numbers = #tpu.dot_dimension_numbers<[1], [0], [0], [1], [0, 0, 1, 1], [], []>} : vector<32x128xbf16>, vector<128x128xbf16>, vector<32x128xf32> -> vector<32x128xf32>
    %c0_10 = arith.constant 0 : index
    %c0_11 = arith.constant 0 : index
    %16 = vector.load %arg9[%c0_10, %c0_11] : memref<1x128xf32, #tpu.memory_space<vmem>>, vector<1x128xf32>
    %17 = vector.broadcast %16 : vector<1x128xf32> to vector<32x128xf32>
    %18 = arith.addf %15, %17 : vector<32x128xf32>
    %c1 = arith.constant 1 : index
    %19 = memref.load %arg1[%c1] : memref<3xf32, #tpu.memory_space<smem>>
    %cst_12 = arith.constant 0.000000e+00 : f32
    %20 = vector.broadcast %cst_12 : f32 to vector<32x128xf32>
    %21 = arith.cmpf oge, %18, %20 : vector<32x128xf32>
    %22 = vector.broadcast %19 : f32 to vector<32x128xf32>
    %23 = arith.mulf %22, %18 : vector<32x128xf32>
    %24 = arith.select %21, %18, %23 : vector<32x128xi1>, vector<32x128xf32>
    %25 = arith.truncf %24 : vector<32x128xf32> to vector<32x128xbf16>
    %c0_13 = arith.constant 0 : index
    %c0_14 = arith.constant 0 : index
    %26 = vector.load %arg5[%c0_13, %c0_14] : memref<128x128xbf16, #tpu.memory_space<vmem>>, vector<128x128xbf16>
    %cst_15 = arith.constant dense<0.000000e+00> : vector<32x128xf32>
    %27 = tpu.matmul %25, %26, %cst_15 {dimension_numbers = #tpu.dot_dimension_numbers<[1], [0], [0], [1], [0, 0, 1, 1], [], []>} : vector<32x128xbf16>, vector<128x128xbf16>, vector<32x128xf32> -> vector<32x128xf32>
    %c0_16 = arith.constant 0 : index
    %c0_17 = arith.constant 0 : index
    %28 = vector.load %arg10[%c0_16, %c0_17] : memref<1x128xf32, #tpu.memory_space<vmem>>, vector<1x128xf32>
    %29 = vector.broadcast %28 : vector<1x128xf32> to vector<32x128xf32>
    %30 = arith.addf %27, %29 : vector<32x128xf32>
    %c2 = arith.constant 2 : index
    %31 = memref.load %arg1[%c2] : memref<3xf32, #tpu.memory_space<smem>>
    %cst_18 = arith.constant 0.000000e+00 : f32
    %32 = vector.broadcast %cst_18 : f32 to vector<32x128xf32>
    %33 = arith.cmpf oge, %30, %32 : vector<32x128xf32>
    %34 = vector.broadcast %31 : f32 to vector<32x128xf32>
    %35 = arith.mulf %34, %30 : vector<32x128xf32>
    %36 = arith.select %33, %30, %35 : vector<32x128xi1>, vector<32x128xf32>
    %37 = arith.truncf %36 : vector<32x128xf32> to vector<32x128xbf16>
    %c0_19 = arith.constant 0 : index
    %c0_20 = arith.constant 0 : index
    %38 = vector.load %arg6[%c0_19, %c0_20] : memref<128x32xbf16, #tpu.memory_space<vmem>>, vector<128x32xbf16>
    %cst_21 = arith.constant dense<0.000000e+00> : vector<32x32xf32>
    %39 = tpu.matmul %37, %38, %cst_21 {dimension_numbers = #tpu.dot_dimension_numbers<[1], [0], [0], [1], [0, 0, 1, 1], [], []>} : vector<32x128xbf16>, vector<128x32xbf16>, vector<32x32xf32> -> vector<32x32xf32>
    %c0_22 = arith.constant 0 : index
    %c0_23 = arith.constant 0 : index
    %40 = vector.load %arg11[%c0_22, %c0_23] : memref<1x32xf32, #tpu.memory_space<vmem>>, vector<1x32xf32>
    %41 = vector.broadcast %40 : vector<1x32xf32> to vector<32x32xf32>
    %42 = arith.addf %39, %41 : vector<32x32xf32>
    %cst_24 = arith.constant 2.000000e+01 : f32
    %43 = vector.broadcast %cst_24 : f32 to vector<32x32xf32>
    %44 = arith.cmpf ogt, %42, %43 : vector<32x32xf32>
    %cst_25 = arith.constant 2.000000e+01 : f32
    %45 = vector.broadcast %cst_25 : f32 to vector<32x32xf32>
    %46 = arith.minimumf %42, %45 : vector<32x32xf32>
    %47 = math.exp %46 : vector<32x32xf32>
    %48 = math.log1p %47 : vector<32x32xf32>
    %49 = arith.select %44, %42, %48 : vector<32x32xi1>, vector<32x32xf32>
    %c0_26 = arith.constant 0 : index
    %c0_27 = arith.constant 0 : index
    %50 = vector.load %arg12[%c0_26, %c0_27] : memref<1x32xf32, #tpu.memory_space<vmem>>, vector<1x32xf32>
    %c0_28 = arith.constant 0 : index
    %c0_29 = arith.constant 0 : index
    %51 = vector.load %arg13[%c0_28, %c0_29] : memref<1x32xf32, #tpu.memory_space<vmem>>, vector<1x32xf32>
    %52 = vector.broadcast %50 : vector<1x32xf32> to vector<32x32xf32>
    %53 = arith.maximumf %52, %49 : vector<32x32xf32>
    %54 = vector.broadcast %51 : vector<1x32xf32> to vector<32x32xf32>
    %55 = arith.minimumf %54, %53 : vector<32x32xf32>
    %56 = arith.truncf %55 : vector<32x32xf32> to vector<32x32xbf16>
    %57 = arith.extf %56 : vector<32x32xbf16> to vector<32x32xf32>
    %58 = arith.subf %55, %57 : vector<32x32xf32>
    %59 = arith.truncf %58 : vector<32x32xf32> to vector<32x32xbf16>
    %c0_30 = arith.constant 0 : index
    %c0_31 = arith.constant 0 : index
    %60 = vector.load %arg7[%c0_30, %c0_31] : memref<32x384xbf16, #tpu.memory_space<vmem>>, vector<32x384xbf16>
    %cst_32 = arith.constant dense<0.000000e+00> : vector<32x384xf32>
    %61 = tpu.matmul %56, %60, %cst_32 {dimension_numbers = #tpu.dot_dimension_numbers<[1], [0], [0], [1], [0, 0, 1, 1], [], []>} : vector<32x32xbf16>, vector<32x384xbf16>, vector<32x384xf32> -> vector<32x384xf32>
    %cst_33 = arith.constant dense<0.000000e+00> : vector<32x384xf32>
    %62 = tpu.matmul %59, %60, %cst_33 {dimension_numbers = #tpu.dot_dimension_numbers<[1], [0], [0], [1], [0, 0, 1, 1], [], []>} : vector<32x32xbf16>, vector<32x384xbf16>, vector<32x384xf32> -> vector<32x384xf32>
    %63 = arith.addf %61, %62 : vector<32x384xf32>
    %64 = vector.extract_strided_slice %63 {offsets = [0, 0], sizes = [32, 128], strides = [1, 1]} : vector<32x384xf32> to vector<32x128xf32>
    %65 = vector.extract_strided_slice %63 {offsets = [0, 128], sizes = [32, 128], strides = [1, 1]} : vector<32x384xf32> to vector<32x128xf32>
    %66 = vector.extract_strided_slice %63 {offsets = [0, 256], sizes = [32, 128], strides = [1, 1]} : vector<32x384xf32> to vector<32x128xf32>
    %c0_34 = arith.constant 0 : index
    %c0_35 = arith.constant 0 : index
    %67 = vector.load %arg14[%c0_34, %c0_35] : memref<1x128xf32, #tpu.memory_space<vmem>>, vector<1x128xf32>
    %c0_36 = arith.constant 0 : index
    %c0_37 = arith.constant 0 : index
    %68 = vector.load %arg15[%c0_36, %c0_37] : memref<1x128xf32, #tpu.memory_space<vmem>>, vector<1x128xf32>
    %cst_38 = arith.constant 0.000000e+00 : f32
    %69 = vector.broadcast %cst_38 : f32 to vector<1x128xf32>
    %70 = arith.subf %69, %67 : vector<1x128xf32>
    %71 = vector.broadcast %70 : vector<1x128xf32> to vector<32x128xf32>
    %72 = arith.mulf %71, %66 : vector<32x128xf32>
    %73 = math.exp %72 : vector<32x128xf32>
    %74 = arith.mulf %65, %73 : vector<32x128xf32>
    %cst_39 = arith.constant 1.000000e+00 : f32
    %75 = vector.broadcast %cst_39 : f32 to vector<32x128xf32>
    %76 = arith.subf %75, %74 : vector<32x128xf32>
    %77 = arith.mulf %64, %76 : vector<32x128xf32>
    %cst_40 = arith.constant 0.000000e+00 : f32
    %78 = vector.broadcast %cst_40 : f32 to vector<32x128xf32>
    %79 = arith.subf %78, %77 : vector<32x128xf32>
    %80 = vector.broadcast %68 : vector<1x128xf32> to vector<32x128xf32>
    %81 = arith.mulf %79, %80 : vector<32x128xf32>
    %82 = math.exp %81 : vector<32x128xf32>
    %c0_41 = arith.constant 0 : index
    %c0_42 = arith.constant 0 : index
    %83 = vector.load %arg16[%c0_41, %c0_42] : memref<32x128xf32, #tpu.memory_space<vmem>>, vector<32x128xf32>
    tpu.vector_store %arg16[%c0_41, %c0_42], %82 {strides = array<i32>} : memref<32x128xf32, #tpu.memory_space<vmem>>, vector<32x128xf32>,
    %c0_43 = arith.constant 0 : index
    %c0_44 = arith.constant 0 : index
    %84 = vector.load %arg17[%c0_43, %c0_44] : memref<32x128xf32, #tpu.memory_space<vmem>>, vector<32x128xf32>
    tpu.vector_store %arg17[%c0_43, %c0_44], %77 {strides = array<i32>} : memref<32x128xf32, #tpu.memory_space<vmem>>, vector<32x128xf32>,
    %c0_45 = arith.constant 0 : index
    %c0_46 = arith.constant 0 : index
    %85 = vector.load %arg18[%c0_45, %c0_46] : memref<32x32xf32, #tpu.memory_space<vmem>>, vector<32x32xf32>
    tpu.vector_store %arg18[%c0_45, %c0_46], %49 {strides = array<i32>} : memref<32x32xf32, #tpu.memory_space<vmem>>, vector<32x32xf32>,
    return
  }
  func.func @transform_0(%arg0: i32) -> i32 {
    %c0_i32 = arith.constant 0 : i32
    %c0_i32_0 = arith.constant 0 : i32
    return %c0_i32 : i32
  }
  func.func @transform_1(%arg0: i32) -> (i32, i32) {
    %c0_i32 = arith.constant 0 : i32
    %c0_i32_0 = arith.constant 0 : i32
    return %arg0, %c0_i32 : i32, i32
  }
  func.func @transform_2(%arg0: i32) -> (i32, i32) {
    %c0_i32 = arith.constant 0 : i32
    %c0_i32_0 = arith.constant 0 : i32
    %c0_i32_1 = arith.constant 0 : i32
    return %c0_i32, %c0_i32_0 : i32, i32
  }
  func.func @transform_3(%arg0: i32) -> (i32, i32) {
    %c0_i32 = arith.constant 0 : i32
    %c0_i32_0 = arith.constant 0 : i32
    %c0_i32_1 = arith.constant 0 : i32
    return %c0_i32, %c0_i32_0 : i32, i32
  }
  func.func @transform_4(%arg0: i32) -> (i32, i32) {
    %c0_i32 = arith.constant 0 : i32
    %c0_i32_0 = arith.constant 0 : i32
    %c0_i32_1 = arith.constant 0 : i32
    return %c0_i32, %c0_i32_0 : i32, i32
  }
  func.func @transform_5(%arg0: i32) -> (i32, i32) {
    %c0_i32 = arith.constant 0 : i32
    %c0_i32_0 = arith.constant 0 : i32
    %c0_i32_1 = arith.constant 0 : i32
    return %c0_i32, %c0_i32_0 : i32, i32
  }
  func.func @transform_6(%arg0: i32) -> (i32, i32) {
    %c0_i32 = arith.constant 0 : i32
    %c0_i32_0 = arith.constant 0 : i32
    %c0_i32_1 = arith.constant 0 : i32
    return %c0_i32, %c0_i32_0 : i32, i32
  }
  func.func @transform_7(%arg0: i32) -> (i32, i32) {
    %c0_i32 = arith.constant 0 : i32
    %c0_i32_0 = arith.constant 0 : i32
    %c0_i32_1 = arith.constant 0 : i32
    return %c0_i32, %c0_i32_0 : i32, i32
  }
  func.func @transform_8(%arg0: i32) -> (i32, i32) {
    %c0_i32 = arith.constant 0 : i32
    %c0_i32_0 = arith.constant 0 : i32
    %c0_i32_1 = arith.constant 0 : i32
    return %c0_i32, %c0_i32_0 : i32, i32
  }
  func.func @transform_9(%arg0: i32) -> (i32, i32) {
    %c0_i32 = arith.constant 0 : i32
    %c0_i32_0 = arith.constant 0 : i32
    %c0_i32_1 = arith.constant 0 : i32
    return %c0_i32, %c0_i32_0 : i32, i32
  }
  func.func @transform_10(%arg0: i32) -> (i32, i32) {
    %c0_i32 = arith.constant 0 : i32
    %c0_i32_0 = arith.constant 0 : i32
    %c0_i32_1 = arith.constant 0 : i32
    return %c0_i32, %c0_i32_0 : i32, i32
  }
  func.func @transform_11(%arg0: i32) -> (i32, i32) {
    %c0_i32 = arith.constant 0 : i32
    %c0_i32_0 = arith.constant 0 : i32
    %c0_i32_1 = arith.constant 0 : i32
    return %c0_i32, %c0_i32_0 : i32, i32
  }
  func.func @transform_12(%arg0: i32) -> (i32, i32) {
    %c0_i32 = arith.constant 0 : i32
    %c0_i32_0 = arith.constant 0 : i32
    %c0_i32_1 = arith.constant 0 : i32
    return %c0_i32, %c0_i32_0 : i32, i32
  }
  func.func @transform_13(%arg0: i32) -> (i32, i32) {
    %c0_i32 = arith.constant 0 : i32
    %c0_i32_0 = arith.constant 0 : i32
    %c0_i32_1 = arith.constant 0 : i32
    return %c0_i32, %c0_i32_0 : i32, i32
  }
  func.func @transform_14(%arg0: i32) -> (i32, i32) {
    %c0_i32 = arith.constant 0 : i32
    %c0_i32_0 = arith.constant 0 : i32
    %c0_i32_1 = arith.constant 0 : i32
    return %c0_i32, %c0_i32_0 : i32, i32
  }
  func.func @transform_15(%arg0: i32) -> (i32, i32) {
    %c0_i32 = arith.constant 0 : i32
    %c0_i32_0 = arith.constant 0 : i32
    return %arg0, %c0_i32 : i32, i32
  }
  func.func @transform_16(%arg0: i32) -> (i32, i32) {
    %c0_i32 = arith.constant 0 : i32
    %c0_i32_0 = arith.constant 0 : i32
    return %arg0, %c0_i32 : i32, i32
  }
  func.func @transform_17(%arg0: i32) -> (i32, i32) {
    %c0_i32 = arith.constant 0 : i32
    %c0_i32_0 = arith.constant 0 : i32
    return %arg0, %c0_i32 : i32, i32
  }
}

</mosaic_0001>

<bundles_post_ra>
// kernel: tpu_custom_call.1
= control target key start
LH: loop header
LB: loop body
LE: loop exit
PB: predicated region body
PF: predicated region fallthrough
CT: control target
= control target key end

     0   :  { %s2993_s0 = inlined_call_operand.vmem [shape: f32[3], index: 0, kind: input, shape index: {}]   ;;  %s2994_s1 = inlined_call_operand.vmem [shape: f32[64,128], index: 1, kind: input, shape index: {}]   ;;  %s2995_s2 = inlined_call_operand.hbm [shape: bf16[128,128], index: 2, kind: input, shape index: {}]   ;;  %s2996_s3 = inlined_call_operand.hbm [shape: bf16[128,128], index: 3, kind: input, shape index: {}]   ;;  %s2997_s4 = inlined_call_operand.hbm [shape: bf16[128,128], index: 4, kind: input, shape index: {}]   ;;  %s2998_s5 = inlined_call_operand.vmem [shape: bf16[128,32], index: 5, kind: input, shape index: {}]   ;;  %s2999_s6 = inlined_call_operand.hbm [shape: bf16[32,384], index: 6, kind: input, shape index: {}]   ;;  %s3000_s7 = inlined_call_operand.vmem [shape: f32[1,128], index: 7, kind: input, shape index: {}]   ;;  %s3001_s8 = inlined_call_operand.vmem [shape: f32[1,128], index: 8, kind: input, shape index: {}]   ;;  %s3002_s9 = inlined_call_operand.vmem [shape: f32[1,128], index: 9, kind: input, shape index: {}]   ;;  %s3003_s10 = inlined_call_operand.vmem [shape: f32[1,32], index: 10, kind: input, shape index: {}]   ;;  %s3004_s11 = inlined_call_operand.vmem [shape: f32[1,32], index: 11, kind: input, shape index: {}]   ;;  %s3005_s12 = inlined_call_operand.vmem [shape: f32[1,32], index: 12, kind: input, shape index: {}]   ;;  %s3006_s13 = inlined_call_operand.vmem [shape: f32[1,128], index: 13, kind: input, shape index: {}]   ;;  %s3007_s14 = inlined_call_operand.vmem [shape: f32[1,128], index: 14, kind: input, shape index: {}]   ;;  %s3008_s15 = inlined_call_operand.hbm [shape: f32[64,128], index: 15, kind: output, shape index: {0}]   ;;  %s3009_s16 = inlined_call_operand.hbm [shape: f32[64,128], index: 16, kind: output, shape index: {1}]   ;;  %s3010_s17 = inlined_call_operand.vmem [shape: f32[64,32], index: 17, kind: output, shape index: {2}]  }
   0x1   :  { %3029 = sst [smem:[#allocation29_spill]] %s2993_s0 }
   0x2   :  { %3030 = sst [smem:[#allocation30_spill]] %s2994_s1 }
   0x3   :  { %3031 = sst [smem:[#allocation31_spill]] %s2996_s3 }
   0x4   :  { %3032 = sst [smem:[#allocation32_spill]] %s3007_s14 }
   0x5   :  { %3033 = sst [smem:[#allocation33_spill]] %s3008_s15 }
   0x6   :  { %3034 = sst [smem:[#allocation34_spill]] %s3009_s16 }
   0x7   :  { %23 = vsyncpa [#allocation5], 0 }
   0x8   :  { %24 = vsyncpa [#allocation3], 0 }
   0x9   :  { %25 = vsyncpa [#allocation8], 0 }
   0xa   :  { %26 = vsyncpa [#allocation11], 0 }
   0xb   :  { %27 = vsyncpa [#allocation4], 0 }
   0xc   :  { %29 = vsyncpa [#allocation4 + $0x1], 0 }
   0xd   :  { %30 = vsyncpa [#allocation14], 0 }
   0xe   :  { %32 = vsyncpa [#allocation14 + $0x1], 0  ;;  %s2575_s24 = smov 0   ;;  %s2577_s25 = smov 0  }
   0xf   :  { %s2579_s26 = smov 0   ;;  %s2581_s27 = smov 0  }
  0x10 LB: > { %3035 = sst [smem:[#allocation21_spill]] %s2457_s24  ;;  %s2596_s28 = sadd.s32 4294967295, %s2469_s27   ;;  %s2469_s27 = sphi %s2581_s27, %s3073_s27   ;;  %s2465_s26 = sphi %s2579_s26, %s3076_s26   ;;  %s2461_s25 = sphi %s2577_s25, %s3075_s25   ;;  %s2457_s24 = sphi %s2575_s24, %s3074_s24  }
  0x11   : > { %3036 = sst [smem:[#allocation22_spill]] %s2461_s25  ;;  %s1813_s29 = sadd.s32 4294967294, %s2469_s27  }
  0x12   : > { %3037 = sst [smem:[#allocation23_spill]] %s2465_s26  ;;  %s2600_s0 = sadd.s32 1, %s2469_s27  }
  0x13   : > { %3038 = sst [smem:[#allocation24_spill]] %s2469_s27  ;;  %s365_s30 = sadd.s32 1, %s2465_s26 }
  0x14   : > { %3039 = sst [smem:[#allocation25_spill]] %s2600_s0  ;;  %s362_s18 = ssub.s32 %s2469_s27, %s2600_s0 }
  0x15   : > { %p375_p0 = scmp.ne.s32.totalorder %s2465_s26, %s2461_s25  ;;  %p363_p1 = scmp.eq.s32.totalorder %s362_s18, 0 }
  0x16   : > { %p376_p2 = scmp.eq.s32.totalorder %s2596_s28, 1  ;;  %p381_p3 = scmp.ne.s32.totalorder %s2461_s25, %s2457_s24 }
  0x17   : > { %p382_p4 = scmp.eq.s32.totalorder %s1813_s29, 1  ;;  %p1814_p7 = scmp.ge.s32.totalorder %s2469_s27, 1 }
  0x18   : > { %s2611_s19 = scalar_select %p363_p1, %s2465_s26, %s365_s30  }
  0x19   : > { %p2613_p5 = por %p376_p2, %p375_p0  ;;  %p2617_p6 = por %p382_p4, %p381_p3 }
  0x1a   : > { %3040 = sst [smem:[#allocation26_spill]] %s2611_s19  ;;  %p441_p8 = scmp.lt.s32.totalorder %s2469_s27, 3 }
  0x1b   : > { %s3041_s1 = scalar_select %p2613_p5, 1, 0 }
  0x1c   : > { %s3043_s20 = scalar_select %p2617_p6, 1, 0 }
  0x1d   : > { %3042 = sst [smem:[#allocation27_spill]] %s3041_s1  ;;  %p3019_p9 = scmp.eq.s32.totalorder %s2596_s28, 0 }
  0x1e   : > { %3044 = sst [smem:[#allocation28_spill]] %s3043_s20  ;;  %p2624_p10 = pnand %p1814_p7, %p441_p8 }
  0x1f   : > { %s2471_s22 = smov [#allocation7]   ;;  %s3046_s18 = sld [smem:[#allocation29_spill]] }
  0x20   : > { %s3045_s21 = scalar_select %p2624_p10, 1, 0 }
  0x21   : > { %p2082_p11 = pneg %p2624_p10  ;;  %s477_s23 = sshll.u32 %s2471_s22, 4  ;;  %s478_s23 = int_to_ptr.vmem [resolvable:$true] %s477_s23 }
  0x22   : > { %s2472_s0 = smov [#allocation6]   ;;  %s3048_s3 = sld [smem:[#allocation31_spill]] }
  0x23   : > { %p2635_p12 = pnand %p3019_p9, %p2082_p11  ;;  %s2641_s20 = sshll.u32 %s2472_s0, 4  ;;  %s465_s20 = int_to_ptr.vmem [resolvable:$true] %s2641_s20 }
  0x25   : > { %s454_s19 = sshll.u32 %s3046_s18, 4  ;;  %p2651_p0 = pneg %p2635_p12  ;;  %s2639_s19 = int_to_ptr.vmem [resolvable:$true] %s454_s19 }
  0x28   : > { %s2232_s22 = scalar_lea.hbm %s3048_s3, 1024 }
  0x29   : > { %p2233_p13 = scmp.ne.s32.totalorder %s3048_s3, %s2232_s22  ;;  %p2239_p3 = scmp.lt.u32.totalorder %s2232_s22, %s3048_s3 }
  0x2b   : > { %p2235_p1 = pnand %p2651_p0, %p2233_p13 }
  0x2d   : > { %p2236_p2 = pneg %p2235_p1 }
  0x2f   : > { %p2241_p4 = pnand %p2239_p3, %p2236_p2 }
  0x31   : > { %2244 = shalt.err (!%p2241_p4)
}
  0x32   : > { %s2245_s24 = scalar_lea.vmem %s478_s23, 1024  ;;  %p2253_p9 = scmp.lt.s32.totalorder %s478_s23, %s478_s23 }
  0x33   : > { %p2246_p7 = scmp.ne.s32.totalorder %s478_s23, %s2245_s24  ;;  %p2254_p6 = scmp.lt.s32.totalorder %s2245_s24, %s2245_s24 }
  0x35   : > { %p2248_p8 = pnand %p2246_p7, %p2651_p0  ;;  %p2255_p5 = por %p2254_p6, %p2253_p9 }
  0x37   : > { %p2249_p11 = pneg %p2248_p8 }
  0x39   : > { %p2256_p10 = pnand %p2255_p5, %p2249_p11 }
  0x3b   : > { %2259 = shalt.err (!%p2256_p10)
}
  0x3c   : > { %s3022_s15 = smov 64   ;;  %s3024_s16 = smov 4  }
  0x3d   : > { %2091 = dma.hbm_to_vmem [thread:$0]  (!%p2635_p12), %s3048_s3, 1024, %s478_s23, [#allocation8], %s3022_s15, %s3022_s15, %s3024_s16  }
  0x3e   : > { %s2260_s22 = scalar_lea.vmem %s2639_s19, 16  ;;  %p2268_p9 = scmp.lt.s32.totalorder %s2639_s19, %s2639_s19 }
  0x3f   : > { %p2261_p13 = scmp.ne.s32.totalorder %s2639_s19, %s2260_s22  ;;  %p2269_p10 = scmp.lt.s32.totalorder %s2260_s22, %s2260_s22 }
  0x41   : > { %p2263_p5 = pnand %p2261_p13, %p2651_p0  ;;  %p2270_p1 = por %p2269_p10, %p2268_p9 }
  0x43   : > { %p2264_p6 = pneg %p2263_p5 }
  0x45   : > { %p2271_p2 = pnand %p2270_p1, %p2264_p6 }
  0x47   : > { %2274 = shalt.err (!%p2271_p2)
}
  0x48   : > { %s2475_s30 = smov [#allocation2]   ;;  %s2275_s24 = scalar_lea.hbm %s2995_s2, 1024 }
  0x49   : > { %2085 = dma.vmem_to_smem (!%p2635_p12), %s2639_s19, 16, %s2475_s30, [#allocation5]  }
  0x4a   : > { %p2276_p3 = scmp.ne.s32.totalorder %s2995_s2, %s2275_s24  ;;  %p2282_p8 = scmp.lt.u32.totalorder %s2275_s24, %s2995_s2 }
  0x4c   : > { %p2278_p4 = pnand %p2276_p3, %p2651_p0 }
  0x4e   : > { %p2279_p7 = pneg %p2278_p4 }
  0x50   : > { %p2284_p11 = pnand %p2282_p8, %p2279_p7 }
  0x52   : > { %2287 = shalt.err (!%p2284_p11)
}
  0x53   : > { %s2288_s16 = scalar_lea.vmem %s465_s20, 1024  ;;  %p2296_p9 = scmp.lt.s32.totalorder %s465_s20, %s465_s20 }
  0x54   : > { %p2289_p13 = scmp.ne.s32.totalorder %s465_s20, %s2288_s16  ;;  %p2297_p10 = scmp.lt.s32.totalorder %s2288_s16, %s2288_s16 }
  0x56   : > { %p2291_p5 = pnand %p2289_p13, %p2651_p0  ;;  %p2298_p1 = por %p2297_p10, %p2296_p9 }
  0x58   : > { %p2292_p6 = pneg %p2291_p5 }
  0x5a   : > { %p2299_p2 = pnand %p2298_p1, %p2292_p6 }
  0x5c   : > { %2302 = shalt.err (!%p2299_p2)
}
  0x5d   : > { %s3050_s19 = smov 4   ;;  %s3051_s30 = smov 64  }
  0x5e   : > { %2088 = dma.hbm_to_vmem [thread:$0]  (!%p2635_p12), %s2995_s2, 1024, %s465_s20, [#allocation3], %s3051_s30, %s3051_s30, %s3050_s19  }
  0x5f   : > { %s2476_s0 = smov [#allocation9]   ;;  %s2477_s27 = smov [#allocation10]  }
  0x60   : > { %s490_s24 = sshll.u32 %s2476_s0, 4  ;;  %s506_s18 = sshll.u32 %s2477_s27, 4  ;;  %s491_s24 = int_to_ptr.vmem [resolvable:$true] %s490_s24  ;;  %s507_s18 = int_to_ptr.vmem [resolvable:$true] %s506_s18 }
  0x61   : > { %s2303_s3 = scalar_lea.hbm %s2997_s4, 1024 }
  0x62   : > { %p2304_p3 = scmp.ne.s32.totalorder %s2997_s4, %s2303_s3  ;;  %p2310_p8 = scmp.lt.u32.totalorder %s2303_s3, %s2997_s4 }
  0x64   : > { %p2306_p4 = pnand %p2304_p3, %p2651_p0 }
  0x66   : > { %p2307_p7 = pneg %p2306_p4 }
  0x68   : > { %p2312_p11 = pnand %p2310_p8, %p2307_p7 }
  0x6a   : > { %2315 = shalt.err (!%p2312_p11)
}
  0x6b   : > { %s2316_s20 = scalar_lea.vmem %s491_s24, 1024  ;;  %p2324_p9 = scmp.lt.s32.totalorder %s491_s24, %s491_s24 }
  0x6c   : > { %p2317_p13 = scmp.ne.s32.totalorder %s491_s24, %s2316_s20  ;;  %p2325_p10 = scmp.lt.s32.totalorder %s2316_s20, %s2316_s20 }
  0x6e   : > { %p2319_p5 = pnand %p2317_p13, %p2651_p0  ;;  %p2326_p1 = por %p2325_p10, %p2324_p9 }
  0x70   : > { %p2320_p6 = pneg %p2319_p5 }
  0x72   : > { %p2327_p2 = pnand %p2326_p1, %p2320_p6 }
  0x74   : > { %2330 = shalt.err (!%p2327_p2)
}
  0x75   : > { %2094 = dma.hbm_to_vmem [thread:$0]  (!%p2635_p12), %s2997_s4, 1024, %s491_s24, [#allocation8], %s3051_s30, %s3051_s30, %s3050_s19  }
  0x76   : > { %s2331_s23 = scalar_lea.hbm %s2999_s6, 768 }
  0x77   : > { %p2332_p3 = scmp.ne.s32.totalorder %s2999_s6, %s2331_s23  ;;  %p2338_p8 = scmp.lt.u32.totalorder %s2331_s23, %s2999_s6 }
  0x79   : > { %p2334_p4 = pnand %p2332_p3, %p2651_p0 }
  0x7b   : > { %p2335_p7 = pneg %p2334_p4 }
  0x7d   : > { %p2340_p11 = pnand %p2338_p8, %p2335_p7 }
  0x7f   : > { %2343 = shalt.err (!%p2340_p11)
}
  0x80   : > { %s2344_s15 = scalar_lea.vmem %s507_s18, 768  ;;  %p2352_p9 = scmp.lt.s32.totalorder %s507_s18, %s507_s18 }
  0x81   : > { %p2345_p13 = scmp.ne.s32.totalorder %s507_s18, %s2344_s15  ;;  %p2353_p10 = scmp.lt.s32.totalorder %s2344_s15, %s2344_s15 }
  0x83   : > { %p2347_p5 = pnand %p2345_p13, %p2651_p0  ;;  %p2354_p1 = por %p2353_p10, %p2352_p9 }
  0x85   : > { %p2348_p6 = pneg %p2347_p5 }
  0x87   : > { %p2355_p2 = pnand %p2354_p1, %p2348_p6 }
  0x89   : > { %2358 = shalt.err (!%p2355_p2)
}
  0x8a   : > { %s2478_s19 = smov 192   ;;  %s2479_s30 = smov 12  }
  0x8b   : > { %2097 = dma.hbm_to_vmem [thread:$0]  (!%p2635_p12), %s2999_s6, 768, %s507_s18, [#allocation11], %s2478_s19, %s2478_s19, %s2479_s30  }
  0x8c   : > { %p3052_p3 = scmp.ne.s32.totalorder %s3045_s21, 0 }
  0x8d   : > { %p3053_p4 = scmp.eq.s32.totalorder (!%p3052_p3), %s2596_s28, 0 }
  0x8e   : > { %555 = sbr.rel (%p3052_p3) target bundleno = 1423 (0x58f), region = 80 }
  0x95   : > { %2432 = dma.done.wait (%p3053_p4), [#allocation5], 16   ;;  %p3054_p0 = pmov %p3053_p4 }
  0x97   : > { %2434 = vsyncadd (%p3054_p0), [#allocation5], 4294967280  ;;  %p3055_p7 = pmov %p3054_p0 }
  0x98   : > { %p3056_p8 = pmov %p3054_p0 }
  0x99   : > { %2436 = dma.done.wait (%p3055_p7), [#allocation3], 1024  }
  0x9a   : > { %2438 = vsyncadd (%p3056_p8), [#allocation3], 4294966272  ;;  %p3057_p11 = pmov %p3054_p0 }
  0x9b   : > { %p3058_p12 = pmov %p3054_p0 }
  0x9c   : > { %2440 = dma.done.wait (%p3057_p11), [#allocation8], 2048  }
  0x9d   : > { %2442 = vsyncadd (%p3058_p12), [#allocation8], 4294965248  ;;  %p3059_p13 = pmov %p3054_p0 }
  0x9e   : > { %p3060_p5 = pmov %p3054_p0 }
  0x9f   : > { %2444 = dma.done.wait (%p3059_p13), [#allocation11], 768  }
  0xa0   : > { %2446 = vsyncadd (%p3060_p5), [#allocation11], 4294966528 }
  0xa1   : > { %577 = sfence }
  0xa2   : > { %v2160_v0 = vld [vmem:[#allocation6] sm:$0xff]   ;;  %s1829_s26 = sshll.u32 %s2596_s28, 2  ;;  %v2161_v1 = vld [vmem:[#allocation6 + $0x8] sm:$0xff]   ;;  %v2162_v2 = vld [vmem:[#allocation6 + $0x10] sm:$0xff]   ;;  %s3061_s14 = sld [smem:[#allocation30_spill]]  ;;  %vm1313_vm13 = vcmask 261120  }
  0xa3   : > { %p635_p6 = scmp.lt.s32.totalorder %s1829_s26, 7  ;;  %1946 = vmatprep.subr.bf16.mxu0 %v2160_v0  ;;  %v2163_v3 = vld [vmem:[#allocation6 + $0x18] sm:$0xff]   ;;  %v2168_v7 = vld [vmem:[#allocation7] sm:$0xff]   ;;  %v2169_v8 = vld [vmem:[#allocation7 + $0x8] sm:$0xff]   ;;  %s775_s25 = sld [smem:[#allocation2]] }
  0xa4   : > { %1947 = vmatpush3.bf16.msra.mxu0 %v2160_v0  ;;  %v2164_v9 = vld [vmem:[#allocation6 + $0x20] sm:$0xff]   ;;  %1966 = vmatprep.subr.bf16.mxu1 %v2168_v7  ;;  %v2165_v10 = vld [vmem:[#allocation6 + $0x28] sm:$0xff]   ;;  %v2170_v11 = vld [vmem:[#allocation7 + $0x10] sm:$0xff]   ;;  %s1851_s18 = sld [smem:[#allocation2 + $0x1]]  ;;  %s1861_s16 = sld [smem:[#allocation2 + $0x2]] }
  0xa5   : > { %s3078_s26 = smov (!%p635_p6, %s1829_s26), 7  ;;  %1948 = vmatprep.subr.bf16.mxu0 %v2161_v1  ;;  %1967 = vmatpush3.bf16.msra.mxu1 %v2168_v7  ;;  %v2171_v12 = vld [vmem:[#allocation7 + $0x18] sm:$0xff]   ;;  %v2166_v13 = vld [vmem:[#allocation6 + $0x30] sm:$0xff]   ;;  %v2172_v14 = vld [vmem:[#allocation7 + $0x20] sm:$0xff]   ;;  %s3062_s23 = sld [smem:[#allocation22_spill]] }
  0xa6   : > { %s1830_s21 = sshll.u32 %s3078_s26, 3  ;;  %1968 = vmatprep.subr.bf16.mxu1 %v2169_v8  ;;  %v2167_v15 = vld [vmem:[#allocation6 + $0x38] sm:$0xff]   ;;  %v2173_v19 = vld [vmem:[#allocation7 + $0x28] sm:$0xff]   ;;  %v2174_v20 = vld [vmem:[#allocation7 + $0x30] sm:$0xff]   ;;  %s1896_s15 = sshll.u32 %s2596_s28, 9 }
  0xa7   : > { %v2175_v21 = vld [vmem:[#allocation7 + $0x38] sm:$0xff]   ;;  %v2176_v22 = vld [vmem:[#allocation9] sm:$0xff]   ;;  %v2177_v23 = vld [vmem:[#allocation9 + $0x8] sm:$0xff]   ;;  %s3063_s24 = sld [smem:[#allocation32_spill]]  ;;  %s3064_s20 = sld [smem:[#allocation27_spill]] }
  0xa8   : > { %s2767_s3 = scalar_lea.vmem %s3061_s14, %s1830_s21  ;;  %1949 = vmatpush3.bf16.msra.mxu0 %v2161_v1  ;;  %v2178_v24 = vld [vmem:[#allocation9 + $0x10] sm:$0xff]   ;;  %v2179_v25 = vld [vmem:[#allocation9 + $0x18] sm:$0xff]   ;;  %v2180_v26 = vld [vmem:[#allocation9 + $0x20] sm:$0xff]   ;;  %s3065_s14 = sld [smem:[#allocation34_spill]] }
  0xa9   : > { %1950 = vmatprep.subr.bf16.mxu0 %v2162_v2  ;;  %v649_v4 = vld [vmem:[%s2767_s3] sm:$0xff]  ;;  %v650_v5 = vld [vmem:[%s2767_s3 + $0x8] sm:$0xff]  ;;  %1969 = vmatpush3.bf16.msra.mxu1 %v2169_v8  ;;  %v651_v16 = vld [vmem:[%s2767_s3 + $0x10] sm:$0xff]  ;;  %v780_v29 = vstv %s775_s25  ;;  %s2481_s25 = smov [#allocation13]  }
  0xaa   : > { %v653_v6 = vpack.c.bf16 %v650_v5, %v649_v4  ;;  %1970 = vmatprep.subr.bf16.mxu1 %v2170_v11  ;;  %v652_v17 = vld [vmem:[%s2767_s3 + $0x18] sm:$0xff]  ;;  %v1833_v27 = vld [vmem:[%s3000_s7] ss:$0 sm:$0xff]  ;;  %v2181_v47 = vld [vmem:[#allocation9 + $0x28] sm:$0xff]   ;;  %v916_v57 = vstv %s1851_s18  ;;  %s2849_s3 = scalar_lea.vmem %s3010_s17, %s1830_s21  ;;  %s2363_s1 = sshll.u32 %s2481_s25, 4  ;;  %s2364_s1 = int_to_ptr.vmem [resolvable:$false] %s2363_s1 }
  0xab   : > { %v654_v18 = vpack.c.bf16 %v652_v17, %v651_v16  ;;  %v2182_v48 = vld [vmem:[#allocation9 + $0x30] sm:$0xff]   ;;  %v2183_v49 = vld [vmem:[#allocation9 + $0x38] sm:$0xff]   ;;  %v2184_v50 = vld [vmem:[%s2998_s5] sm:$0xff]   ;;  %v1052_v16 = vstv %s1861_s16  ;;  %s2893_s0 = sand.u32 1, %s3062_s23   ;;  %s2365_s23 = scalar_lea.vmem %s2364_s1, 1024 }
  0xac   : > { %1951 = vmatpush3.bf16.msra.mxu0 %v2162_v2  ;;  %1962 = vmatprep.mubr.bf16.mxu0 %v653_v6  ;;  %v2185_v51 = vld [vmem:[%s2998_s5 + $0x8] sm:$0xff]   ;;  %v2186_v52 = vld [vmem:[%s2998_s5 + $0x10] sm:$0xff]   ;;  %v2187_v53 = vld [vmem:[%s2998_s5 + $0x18] sm:$0xff]   ;;  %s1827_s27 = sshll.u32 %s2893_s0, 5  ;;  %s1603_s26 = scalar_lea.sflag [#allocation14], %s2893_s0 }
  0xad   : > { %1952 = vmatprep.subr.bf16.mxu0 %v2163_v3  ;;  %1971 = vmatpush3.bf16.msra.mxu1 %v2170_v11  ;;  %v2188_v54 = vld [vmem:[%s2998_s5 + $0x20] sm:$0xff]   ;;  %v2189_v11 = vld [vmem:[%s2998_s5 + $0x28] sm:$0xff]   ;;  %s626_s22 = scalar_lea.vmem [#allocation13], %s1827_s27  ;;  %p3066_p10 = scmp.ne.s32.totalorder %s3064_s20, 0 }
  0xae   : > { %1972 = vmatprep.subr.bf16.mxu1 %v2171_v12  ;;  %v1842_v55 = vld [vmem:[%s3001_s8] ss:$0 sm:$0xff]  ;;  %s1637_s16 = sshll.u32 %s626_s22, 4  ;;  %s2909_s16 = int_to_ptr.vmem [resolvable:$true] %s1637_s16 }
  0xaf   : > { %s2359_s21 = scalar_lea.vmem %s2909_s16, 512  ;;  %p2366_p3 = scmp.lt.s32.totalorder %s2909_s16, %s2364_s1 }
  0xb0   : > { %1953 = vmatpush3.bf16.msra.mxu0 %v2163_v3  ;;  %p2360_p9 = scmp.ne.s32.totalorder %s2909_s16, %s2359_s21  ;;  %p2367_p4 = scmp.lt.s32.totalorder %s2365_s23, %s2359_s21 }
  0xb1   : > { %1954 = vmatprep.subr.bf16.mxu0 %v2164_v9  ;;  %1973 = vmatpush3.bf16.msra.mxu1 %v2171_v12  ;;  %v2190_v12 = vld [vmem:[%s2998_s5 + $0x30] sm:$0xff]  }
  0xb2   : > { %1974 = vmatprep.subr.bf16.mxu1 %v2172_v14  ;;  %p2361_p1 = pnand %p2360_p9, %p3066_p10  ;;  %p2368_p0 = por %p2367_p4, %p2366_p3 }
  0xb4   : > { %1955 = vmatpush3.bf16.msra.mxu0 %v2164_v9  ;;  %p2362_p2 = pneg %p2361_p1 }
  0xb5   : > { %1956 = vmatprep.subr.bf16.mxu0 %v2165_v10  ;;  %1975 = vmatpush3.bf16.msra.mxu1 %v2172_v14  ;;  %v1852_v14 = vld [vmem:[%s3002_s9] ss:$0 sm:$0xff] }
  0xb6   : > { %1976 = vmatprep.subr.bf16.mxu1 %v2173_v19  ;;  %p2369_p7 = pnand %p2368_p0, %p2362_p2 }
  0xb8   : > { %1957 = vmatpush3.bf16.msra.mxu0 %v2165_v10 }
  0xb9   : > { %1958 = vmatprep.subr.bf16.mxu0 %v2166_v13  ;;  %1977 = vmatpush3.bf16.msra.mxu1 %v2173_v19 }
  0xba   : > { %1978 = vmatprep.subr.bf16.mxu1 %v2174_v20 }
  0xbc   : > { %1959 = vmatpush3.bf16.msra.mxu0 %v2166_v13  ;;  %v2191_v13 = vld [vmem:[%s2998_s5 + $0x38] sm:$0xff]  }
  0xbd   : > { %1960 = vmatprep.subr.bf16.mxu0 %v2167_v15  ;;  %1979 = vmatpush3.bf16.msra.mxu1 %v2174_v20 }
  0xbe   : > { %1980 = vmatprep.subr.bf16.mxu1 %v2175_v21 }
  0xc0   : > { %1961 = vmatpush3.bf16.msra.mxu0 %v2167_v15 }
  0xc1   : > { %1981 = vmatpush3.bf16.msra.mxu1 %v2175_v21  ;;  %1986 = vmatprep.subr.bf16.mxu0 %v2176_v22 }
  0xc2   : > { %2006 = vmatprep.subr.bf16.mxu1 %v2184_v50 }
  0xc3   : > { %1963 = vmatmul.mubr.bf16.vlgmr.msra.gmra.mrb[0].mxu0 %v654_v18 }
  0xc4   : > { %1987 = vmatpush3.bf16.msra.mxu0 %v2176_v22 }
  0xc5   : > { %1988 = vmatprep.subr.bf16.mxu0 %v2177_v23 }
  0xc8   : > { %1989 = vmatpush3.bf16.msra.mxu0 %v2177_v23 }
  0xc9   : > { %1990 = vmatprep.subr.bf16.mxu0 %v2178_v24 }
  0xcc   : > { %1991 = vmatpush3.bf16.msra.mxu0 %v2178_v24 }
  0xcd   : > { %1992 = vmatprep.subr.bf16.mxu0 %v2179_v25 }
  0xd0   : > { %1993 = vmatpush3.bf16.msra.mxu0 %v2179_v25 }
  0xd1   : > { %1994 = vmatprep.subr.bf16.mxu0 %v2180_v26 }
  0xd4   : > { %1995 = vmatpush3.bf16.msra.mxu0 %v2180_v26 }
  0xd5   : > { %1996 = vmatprep.subr.bf16.mxu0 %v2181_v47 }
  0xd8   : > { %1997 = vmatpush3.bf16.msra.mxu0 %v2181_v47 }
  0xd9   : > { %1998 = vmatprep.subr.bf16.mxu0 %v2182_v48 }
  0xdc   : > { %1999 = vmatpush3.bf16.msra.mxu0 %v2182_v48 }
  0xdd   : > { %2000 = vmatprep.subr.bf16.mxu0 %v2183_v49 }
  0xe0   : > { %2001 = vmatpush3.bf16.msra.mxu0 %v2183_v49 }
 0x196   : > { %v1964_v28 = vpop.f32.mrb[0].mxu0 }
 0x197   : > { %v769_v30 = vadd.f32 %v1964_v28, %v1833_v27  ;;  %v760_v31 = vpop.f32.mrb[1].mxu0 }
 0x198   : > { %v761_v32 = vadd.f32 %v1833_v27, %v760_v31  ;;  %v1965_v33 = vpop.f32.mrb[2].mxu0 }
 0x199   : > { %v783_v34 = vmul.f32 %v780_v29, %v769_v30  ;;  %v772_v35 = vadd.f32 %v1965_v33, %v1833_v27  ;;  %v763_v36 = vpop.f32.mrb[3].mxu0  ;;  %vm778_vm0 = vcmp.ge.f32.partialorder %v769_v30, 0.0 }
 0x19a   : > { %v781_v37 = vmul.f32 %v780_v29, %v761_v32  ;;  %v764_v38 = vadd.f32 %v1833_v27, %v763_v36  ;;  %vm776_vm2 = vcmp.ge.f32.partialorder %v761_v32, 0.0  ;;  %v2810_v36 = vld [vmem:[#allocation10 + $0x1c] ss:$12 sps:$4 sm:$0xff]  }
 0x19b   : > { %vm779_vm1 = vcmp.ge.f32.partialorder %v772_v35, 0.0  ;;  %v784_v39 = vmul.f32 %v780_v29, %v772_v35  ;;  %v787_v41 = vsel %vm778_vm0, %v769_v30, %v783_v34  ;;  %v2194_v34 = vld [vmem:[#allocation10 + $0x4] ss:$12 sps:$4 sm:$0xff]  }
 0x19c   : > { %v782_v40 = vmul.f32 %v780_v29, %v764_v38  ;;  %vm777_vm3 = vcmp.ge.f32.partialorder %v764_v38, 0.0  ;;  %v785_v43 = vsel %vm776_vm2, %v761_v32, %v781_v37  ;;  %1320 = vmatprep.subr.bf16.mxu0 %v2194_v34  ;;  %v2812_v37 = vld [vmem:[#allocation10 + $0x18] ss:$12 sps:$4 sm:$0xff]  }
 0x19d   : > { %v788_v42 = vsel %vm779_vm1, %v772_v35, %v784_v39  ;;  %v2806_v35 = vld [vmem:[#allocation10] ss:$12 sps:$4 sm:$0xff]   ;;  %v2480_v39 = vmov 0  }
 0x19e   : > { %v786_v44 = vsel %vm777_vm3, %v764_v38, %v782_v40  ;;  %v790_v45 = vpack.c.bf16 %v788_v42, %v787_v41  ;;  %v2816_v38 = vld [vmem:[#allocation10 + $0x8] ss:$12 sps:$4 sm:$0xff]   ;;  %v1862_v40 = vld [vmem:[%s3003_s10] ss:$0 sm:$0xff] }
 0x19f   : > { %v789_v46 = vpack.c.bf16 %v786_v44, %v785_v43 }
 0x1a1   : > { %1982 = vmatprep.mubr.bf16.mxu1 %v789_v46 }
 0x1a2   : > { %1983 = vmatmul.mubr.bf16.vlgmr.msra.gmra.mrb[0].mxu1 %v790_v45 }
 0x1a3   : > { %2007 = vmatpush3.bf16.msra.mxu1 %v2184_v50 }
 0x1a4   : > { %2008 = vmatprep.subr.bf16.mxu1 %v2185_v51 }
 0x1a7   : > { %2009 = vmatpush3.bf16.msra.mxu1 %v2185_v51 }
 0x1a8   : > { %2010 = vmatprep.subr.bf16.mxu1 %v2186_v52 }
 0x1ab   : > { %2011 = vmatpush3.bf16.msra.mxu1 %v2186_v52 }
 0x1ac   : > { %2012 = vmatprep.subr.bf16.mxu1 %v2187_v53 }
 0x1af   : > { %2013 = vmatpush3.bf16.msra.mxu1 %v2187_v53 }
 0x1b0   : > { %2014 = vmatprep.subr.bf16.mxu1 %v2188_v54 }
 0x1b3   : > { %2015 = vmatpush3.bf16.msra.mxu1 %v2188_v54 }
 0x1b4   : > { %2016 = vmatprep.subr.bf16.mxu1 %v2189_v11 }
 0x1b7   : > { %2017 = vmatpush3.bf16.msra.mxu1 %v2189_v11 }
 0x1b8   : > { %2018 = vmatprep.subr.bf16.mxu1 %v2190_v12 }
 0x1bb   : > { %2019 = vmatpush3.bf16.msra.mxu1 %v2190_v12 }
 0x1bc   : > { %2020 = vmatprep.subr.bf16.mxu1 %v2191_v13 }
 0x1bf   : > { %2021 = vmatpush3.bf16.msra.mxu1 %v2191_v13 }
 0x1c0   : > { %2042 = vmatprep.subr.bf16.mxu1 %v2194_v34 }
 0x275   : > { %v1984_v56 = vpop.f32.mrb[0].mxu1 }
 0x276   : > { %v905_v58 = vadd.f32 %v1984_v56, %v1842_v55  ;;  %v896_v59 = vpop.f32.mrb[1].mxu1 }
 0x277   : > { %v897_v60 = vadd.f32 %v1842_v55, %v896_v59  ;;  %v1985_v61 = vpop.f32.mrb[2].mxu1 }
 0x278   : > { %v919_v62 = vmul.f32 %v916_v57, %v905_v58  ;;  %v908_v63 = vadd.f32 %v1985_v61, %v1842_v55  ;;  %v899_v0 = vpop.f32.mrb[3].mxu1  ;;  %vm914_vm4 = vcmp.ge.f32.partialorder %v905_v58, 0.0 }
 0x279   : > { %v917_v1 = vmul.f32 %v916_v57, %v897_v60  ;;  %v900_v2 = vadd.f32 %v1842_v55, %v899_v0  ;;  %vm912_vm5 = vcmp.ge.f32.partialorder %v897_v60, 0.0 }
 0x27a   : > { %vm915_vm6 = vcmp.ge.f32.partialorder %v908_v63, 0.0  ;;  %v920_v3 = vmul.f32 %v916_v57, %v908_v63  ;;  %v923_v5 = vsel %vm914_vm4, %v905_v58, %v919_v62 }
 0x27b   : > { %vm913_vm7 = vcmp.ge.f32.partialorder %v900_v2, 0.0  ;;  %v918_v4 = vmul.f32 %v916_v57, %v900_v2  ;;  %v921_v8 = vsel %vm912_vm5, %v897_v60, %v917_v1 }
 0x27c   : > { %v924_v6 = vsel %vm915_vm6, %v908_v63, %v920_v3 }
 0x27d   : > { %v926_v7 = vpack.c.bf16 %v924_v6, %v923_v5  ;;  %v922_v9 = vsel %vm913_vm7, %v900_v2, %v918_v4 }
 0x27e   : > { %v925_v10 = vpack.c.bf16 %v922_v9, %v921_v8 }
 0x280   : > { %2002 = vmatprep.mubr.bf16.mxu0 %v925_v10 }
 0x281   : > { %2003 = vmatmul.mubr.bf16.vlgmr.msra.gmra.mrb[4].mxu0 %v926_v7 }
 0x282   : > { %1321 = vmatpush1.bf16.msra.mxu0 %v2806_v35  ;;  %1352 = vmatprep.mubr.bf16.mxu0 %v2480_v39 }
 0x283   : > { %1322 = vmatprep.subr.bf16.mxu0 %v2810_v36 }
 0x286   : > { %1323 = vmatpush1.bf16.msra.mxu0 %v2812_v37 }
 0x287   : > { %1428 = vmatprep.subr.bf16.mxu0 %v2194_v34 }
 0x354   : > { %v2004_v15 = vpop.f32.mrb[4].mxu0 }
 0x355   : > { %v1041_v17 = vadd.f32 %v2004_v15, %v1852_v14  ;;  %v1032_v18 = vpop.f32.mrb[5].mxu0 }
 0x356   : > { %v1033_v19 = vadd.f32 %v1852_v14, %v1032_v18  ;;  %v2005_v20 = vpop.f32.mrb[6].mxu0 }
 0x357   : > { %v1055_v21 = vmul.f32 %v1052_v16, %v1041_v17  ;;  %v1044_v22 = vadd.f32 %v2005_v20, %v1852_v14  ;;  %v1035_v23 = vpop.f32.mrb[7].mxu0  ;;  %vm1050_vm8 = vcmp.ge.f32.partialorder %v1041_v17, 0.0 }
 0x358   : > { %v1053_v24 = vmul.f32 %v1052_v16, %v1033_v19  ;;  %v1036_v25 = vadd.f32 %v1852_v14, %v1035_v23  ;;  %vm1048_vm9 = vcmp.ge.f32.partialorder %v1033_v19, 0.0 }
 0x359   : > { %vm1051_vm10 = vcmp.ge.f32.partialorder %v1044_v22, 0.0  ;;  %v1056_v26 = vmul.f32 %v1052_v16, %v1044_v22  ;;  %v1059_v28 = vsel %vm1050_vm8, %v1041_v17, %v1055_v21 }
 0x35a   : > { %vm1049_vm11 = vcmp.ge.f32.partialorder %v1036_v25, 0.0  ;;  %v1054_v27 = vmul.f32 %v1052_v16, %v1036_v25  ;;  %v1057_v31 = vsel %vm1048_vm9, %v1033_v19, %v1053_v24  ;;  %v1871_v16 = vld [vmem:[%s3004_s11] ss:$0 sm:$0xff] }
 0x35b   : > { %v1060_v29 = vsel %vm1051_vm10, %v1044_v22, %v1056_v26 }
 0x35c   : > { %v1062_v30 = vpack.c.bf16 %v1060_v29, %v1059_v28  ;;  %v1058_v32 = vsel %vm1049_vm11, %v1036_v25, %v1054_v27 }
 0x35d   : > { %v1061_v33 = vpack.c.bf16 %v1058_v32, %v1057_v31  ;;  %v1872_v32 = vld [vmem:[%s3005_s12] ss:$0 sm:$0xff] }
 0x35f   : > { %2022 = vmatprep.mubr.bf16.mxu1 %v1061_v33 }
 0x360   : > { %2023 = vmatmul.mubr.bf16.vlgmr.msra.gmra.mrb[4].mxu1 %v1062_v30 }
 0x361   : > { %2044 = vmatpush1.bf16.msra.mxu1 %v2806_v35  ;;  %1362 = vmatprep.mubr.bf16.mxu1 %v2480_v39 }
 0x362   : > { %2043 = vmatprep.subr.bf16.mxu1 %v2810_v36 }
 0x365   : > { %2045 = vmatpush1.bf16.msra.mxu1 %v2812_v37 }
 0x366   : > { %2026 = vmatprep.subr.bf16.mxu1 %v2816_v38 }
 0x433   : > { %v2024_v41 = vpop.f32.mrb[4].mxu1 }
 0x434   : > { %v2826_v42 = vadd.f32 %v2024_v41, %v1862_v40  ;;  %v1168_v43 = vpop.f32.mrb[5].mxu1 }
 0x435   : > { %v2828_v44 = vadd.f32 %v1862_v40, %v1168_v43  ;;  %v2025_v45 = vpop.f32.mrb[6].mxu1 }
 0x436   : > { %v1189_v46 = vmin.f32 %v2826_v42, 20.0  ;;  %v2831_v47 = vadd.f32 %v2025_v45, %v1862_v40  ;;  %v1171_v48 = vpop.f32.mrb[7].mxu1  ;;  %vm1185_vm12 = vcmp.gt.f32.partialorder %v2826_v42, 20.0 }
 0x437   : > { %v1187_v49 = vmin.f32 %v2828_v44, 20.0  ;;  %v2834_v50 = vadd.f32 %v1862_v40, %v1171_v48  ;;  %vm1183_vm14 = vcmp.gt.f32.partialorder %v2828_v44, 20.0 }
 0x438   : > { %v1195_v51 = vmul.f32 1.442695, %v1189_v46  ;;  %v1190_v52 = vmin.f32 %v2831_v47, 20.0  ;;  %vm1186_vm15 = vcmp.gt.f32.partialorder %v2831_v47, 20.0 }
 0x439   : > { %v1191_v53 = vmul.f32 1.442695, %v1187_v49  ;;  %v1188_v54 = vmin.f32 %v2834_v50, 20.0  ;;  %vm1184_vm4 = vcmp.gt.f32.partialorder %v2834_v50, 20.0 }
 0x43a   : > { %2200 = vpow2.f32 %v1195_v51  ;;  %v1197_v55 = vmul.f32 1.442695, %v1190_v52 }
 0x43b   : > { %2202 = vpow2.f32 %v1191_v53  ;;  %v1193_v56 = vmul.f32 1.442695, %v1188_v54 }
 0x43c   : > { %2204 = vpow2.f32 %v1197_v55 }
 0x43d   : > { %2206 = vpow2.f32 %v1193_v56 }
 0x444   : > { %v2201_v57 = vpop.eup %2200 }
 0x445   : > { %v2203_v58 = vpop.eup %2202  ;;  %v1217_v59 = vadd.f32 1.0, %v2201_v57  ;;  %v1220_v1 = vmul.f32 -0.5, %v2201_v57  ;;  %v1223_v6 = vand.u32 2147483647, %v2201_v57 }
 0x446   : > { %v2205_v60 = vpop.eup %2204  ;;  %v1199_v61 = vadd.f32 1.0, %v2203_v58  ;;  %v1202_v2 = vmul.f32 -0.5, %v2203_v58  ;;  %v1205_v8 = vand.u32 2147483647, %v2203_v58 }
 0x447   : > { %v2207_v62 = vpop.eup %2206  ;;  %2208 = vlog2.f32 %v1217_v59  ;;  %v1226_v63 = vadd.f32 1.0, %v2205_v60  ;;  %v1229_v3 = vmul.f32 -0.5, %v2205_v60  ;;  %v1221_v5 = vadd.f32 1.0, %v1220_v1  ;;  %v2199_v59 = vld [vmem:[#allocation10 + $0x20] ss:$12 sps:$4 sm:$0xff]  }
 0x448   : > { %2210 = vlog2.f32 %v1199_v61  ;;  %v1208_v0 = vadd.f32 1.0, %v2207_v62  ;;  %v1211_v4 = vmul.f32 -0.5, %v2207_v62  ;;  %v1203_v7 = vadd.f32 1.0, %v1202_v2 }
 0x449   : > { %2212 = vlog2.f32 %v1226_v63  ;;  %v1230_v9 = vadd.f32 1.0, %v1229_v3  ;;  %v1232_v11 = vand.u32 2147483647, %v2205_v60  ;;  %v1222_v15 = vmul.f32 %v2201_v57, %v1221_v5 }
 0x44a   : > { %2214 = vlog2.f32 %v1208_v0  ;;  %v1212_v12 = vadd.f32 1.0, %v1211_v4  ;;  %vm1224_vm0 = vcmp.lt.f32.partialorder %v1223_v6, 0.0004427343  ;;  %v1204_v19 = vmul.f32 %v2203_v58, %v1203_v7 }
 0x44b   : > { %v1214_v20 = vand.u32 2147483647, %v2207_v62  ;;  %vm1206_vm1 = vcmp.lt.f32.partialorder %v1205_v8, 0.0004427343  ;;  %v1231_v23 = vmul.f32 %v2205_v60, %v1230_v9  ;;  %vm1233_vm2 = vcmp.lt.f32.partialorder %v1232_v11, 0.0004427343 }
 0x44c   : > { %v1213_v27 = vmul.f32 %v2207_v62, %v1212_v12  ;;  %v1534_v62 = vlaneseq }
 0x44d   : > { %vm1215_vm3 = vcmp.lt.f32.partialorder %v1214_v20, 0.0004427343 }
 0x44e   : > { %v1535_v63 = vshrl.u32 %v1534_v62, 7 }
 0x450   : > { %v1536_v1 = vsub.s32 0, %v1535_v63 }
 0x451   : > { %v2209_v10 = vpop.eup %2208 }
 0x452   : > { %v2211_v13 = vpop.eup %2210  ;;  %v1219_v14 = vmul.f32 0.6931472, %v2209_v10 }
 0x453   : > { %v2213_v17 = vpop.eup %2212  ;;  %v1201_v18 = vmul.f32 0.6931472, %v2211_v13 }
 0x454   : > { %v1225_v21 = vsel %vm1224_vm0, %v1222_v15, %v1219_v14  ;;  %v1228_v22 = vmul.f32 0.6931472, %v2213_v17  ;;  %v2215_v24 = vpop.eup %2214 }
 0x455   : > { %v1237_v25 = vsel %vm1185_vm12, %v2826_v42, %v1225_v21  ;;  %v1207_v26 = vsel %vm1206_vm1, %v1204_v19, %v1201_v18  ;;  %v1210_v31 = vmul.f32 0.6931472, %v2215_v24 }
 0x456   : > { %v1249_v28 = vmax.f32 %v1871_v16, %v1237_v25  ;;  %v1235_v29 = vsel %vm1183_vm14, %v2828_v44, %v1207_v26  ;;  %v1234_v30 = vsel %vm1233_vm2, %v1231_v23, %v1228_v22  ;;  %1595 = vst.msk [vmem:[%s2849_s3 + $0x10] sm:$0xff] %vm1313_vm13, %v1237_v25 }
 0x457   : > { %1593 = vst.msk [vmem:[%s2849_s3] sm:$0xff] %vm1313_vm13, %v1235_v29  ;;  %v1238_v33 = vsel %vm1186_vm15, %v2831_v47, %v1234_v30  ;;  %v1247_v34 = vmax.f32 %v1871_v16, %v1235_v29  ;;  %v1216_v41 = vsel %vm1215_vm3, %v1213_v27, %v1210_v31 }
 0x458   : > { %v1250_v40 = vmax.f32 %v1871_v16, %v1238_v33  ;;  %v1236_v42 = vsel %vm1184_vm4, %v2834_v50, %v1216_v41  ;;  %v1259_v43 = vmin.f32 %v1872_v32, %v1249_v28  ;;  %1596 = vst.msk [vmem:[%s2849_s3 + $0x18] sm:$0xff] %vm1313_vm13, %v1238_v33 }
 0x459   : > { %v1248_v45 = vmax.f32 %v1871_v16, %v1236_v42  ;;  %1594 = vst.msk [vmem:[%s2849_s3 + $0x8] sm:$0xff] %vm1313_vm13, %v1236_v42  ;;  %v1257_v46 = vmin.f32 %v1872_v32, %v1247_v34  ;;  %s2907_s3 = scalar_lea.hbm %s3065_s14, %s1896_s15 }
 0x45a   : > { %v1260_v44 = vmin.f32 %v1872_v32, %v1250_v40 }
 0x45b   : > { %v1258_v49 = vmin.f32 %v1872_v32, %v1248_v45 }
 0x45c   : > { %v1262_v48 = vpack.c.bf16 %v1260_v44, %v1259_v43 }
 0x45d   : > { %v1261_v51 = vpack.c.bf16 %v1258_v49, %v1257_v46 }
 0x45e   : > { %v1266_v47 = vunpack.c.h.bf16 %v1262_v48  ;;  %v1265_v52 = vunpack.c.l.bf16 %v1262_v48 }
 0x45f   : > { %v1264_v54 = vunpack.c.h.bf16 %v1261_v51  ;;  %v1263_v56 = vunpack.c.l.bf16 %v1261_v51 }
 0x460   : > { %v1270_v53 = vsub.f32 %v1260_v44, %v1266_v47  ;;  %v1269_v55 = vsub.f32 %v1259_v43, %v1265_v52  ;;  %v1887_v44 = vld [vmem:[%s3063_s24] ss:$0 sm:$0xff] }
 0x461   : > { %v1268_v50 = vsub.f32 %v1258_v49, %v1264_v54  ;;  %v1267_v58 = vsub.f32 %v1257_v46, %v1263_v56 }
 0x462   : > { %v1272_v57 = vpack.c.bf16 %v1270_v53, %v1269_v55 }
 0x463   : > { %v1271_v60 = vpack.c.bf16 %v1268_v50, %v1267_v58 }
 0x464   : > { %1880 = vmatmul.mubr.msk.bf16.vlgmr.msra.gmra.mrb[8].mxu1 %vm1313_vm13, %v1272_v57 }
 0x465   : > { %2027 = vmatpush3.bf16.msra.mxu1 %v2816_v38  ;;  %1879 = vmatmul.mubr.msk.bf16.vlgmr.msra.gmra.mrb[8].mxu0 %vm1313_vm13, %v1271_v60 }
 0x466   : > { %2030 = vmatprep.mubr.msk.bf16.mxu1 %vm1313_vm13, %v1271_v60  ;;  %2028 = vmatprep.subr.bf16.mxu1 %v2199_v59 }
 0x467   : > { %1429 = vmatpush1.bf16.msra.mxu0 %v2806_v35  ;;  %1460 = vmatprep.mubr.bf16.mxu0 %v2480_v39 }
 0x468   : > { %1430 = vmatprep.subr.bf16.mxu0 %v2810_v36 }
 0x469   : > { %2029 = vmatpush3.bf16.msra.mxu1 %v2199_v59 }
 0x46a   : > { %2034 = vmatprep.subr.bf16.mxu1 %v2816_v38 }
 0x46b   : > { %1431 = vmatpush1.bf16.msra.mxu0 %v2812_v37 }
 0x46c   : > { %2031 = vmatmul.mubr.msk.bf16.vlgmr.msra.gmra.mrb[12].mxu1 %vm1313_vm13, %v1272_v57 }
 0x46d   : > { %2035 = vmatpush3.bf16.msra.mxu1 %v2816_v38  ;;  %2038 = vmatprep.mubr.msk.bf16.mxu1 %vm1313_vm13, %v1261_v51  ;;  %v1530_v38 = vld [vmem:[%s3006_s13] sm:$0x1] }
 0x46e   : > { %2036 = vmatprep.subr.bf16.mxu1 %v2199_v59  ;;  %v1532_v0 = vsub.f32 0.0, %v1530_v38 }
 0x470   : > { %v1537_v5 = vrot.slane %v1532_v0, %v1536_v1 }
 0x471   : > { %2037 = vmatpush3.bf16.msra.mxu1 %v2199_v59  ;;  %1883 = vmatmul.mubr.msk.bf16.vlgmr.msra.gmra.mrb[8].mxu0 %vm1313_vm13, %v1261_v51 }
 0x472   : > { %1470 = vmatprep.mubr.bf16.mxu0 %v2480_v39 }
 0x478   : > { %2039 = vmatmul.mubr.msk.bf16.vlgmr.msra.gmra.mrb[12].mxu1 %vm1313_vm13, %v1262_v48 }
 0x479   : > { %1884 = vmatmul.mubr.msk.bf16.gmra.mrb[12].mxu0 %vm1313_vm13, %v1262_v48 }
 0x537   : > { %v1364_v35 = vpop.f32.mrb[8].mxu1 }
 0x538   : > { %v1366_v36 = vpop.f32.mrb[9].mxu1 }
 0x539   : > { %v1368_v61 = vpop.f32.mrb[10].mxu1 }
 0x53a   : > { %v1370_v37 = vpop.f32.mrb[11].mxu1 }
 0x544   : > { %v1462_v2 = vpop.f32.mrb[8].mxu0 }
 0x545   : > { %v1464_v3 = vpop.f32.mrb[9].mxu0 }
 0x546   : > { %v1466_v4 = vpop.f32.mrb[10].mxu0 }
 0x547   : > { %v1468_v39 = vpop.f32.mrb[11].mxu0 }
 0x54b   : > { %v2040_v6 = vpop.f32.mrb[12].mxu1 }
 0x54c   : > { %v1541_v7 = vmul.f32 %v2040_v6, %v1537_v5  ;;  %v1515_v8 = vpop.f32.mrb[13].mxu1  ;;  %v1472_v9 = vpop.f32.mrb[12].mxu0 }
 0x54d   : > { %v1539_v10 = vmul.f32 %v1537_v5, %v1515_v8  ;;  %v2041_v11 = vpop.f32.mrb[14].mxu1  ;;  %v1473_v13 = vadd.f32 %v1472_v9, %v1364_v35  ;;  %v1474_v14 = vpop.f32.mrb[13].mxu0 }
 0x54e   : > { %v1547_v12 = vmul.f32 1.442695, %v1541_v7  ;;  %v1542_v15 = vmul.f32 %v2041_v11, %v1537_v5  ;;  %v1518_v16 = vpop.f32.mrb[15].mxu1  ;;  %v1475_v18 = vadd.f32 %v1474_v14, %v1366_v36  ;;  %v1476_v19 = vpop.f32.mrb[14].mxu0 }
 0x54f   : > { %v1543_v17 = vmul.f32 1.442695, %v1539_v10  ;;  %v1540_v20 = vmul.f32 %v1537_v5, %v1518_v16  ;;  %v1477_v22 = vadd.f32 %v1476_v19, %v1368_v61  ;;  %v1478_v23 = vpop.f32.mrb[15].mxu0 }
 0x550   : > { %2216 = vpow2.f32 %v1547_v12  ;;  %v1549_v21 = vmul.f32 1.442695, %v1542_v15  ;;  %v1479_v25 = vadd.f32 %v1478_v23, %v1370_v37 }
 0x551   : > { %2218 = vpow2.f32 %v1543_v17  ;;  %v1545_v24 = vmul.f32 1.442695, %v1540_v20 }
 0x552   : > { %2220 = vpow2.f32 %v1549_v21 }
 0x553   : > { %2222 = vpow2.f32 %v1545_v24 }
 0x55a   : > { %v2217_v26 = vpop.eup %2216 }
 0x55b   : > { %v2219_v27 = vpop.eup %2218  ;;  %v1553_v28 = vmul.f32 %v2217_v26, %v1475_v18 }
 0x55c   : > { %v2221_v29 = vpop.eup %2220  ;;  %v1551_v30 = vmul.f32 %v2219_v27, %v1464_v3 }
 0x55d   : > { %v2223_v31 = vpop.eup %2222  ;;  %v1557_v32 = vsub.f32 1.0, %v1553_v28  ;;  %v1554_v33 = vmul.f32 %v2221_v29, %v1479_v25 }
 0x55e   : > { %v1555_v34 = vsub.f32 1.0, %v1551_v30  ;;  %v1552_v40 = vmul.f32 %v2223_v31, %v1468_v39 }
 0x55f   : > { %v1561_v41 = vmul.f32 %v1557_v32, %v1473_v13  ;;  %v1558_v42 = vsub.f32 1.0, %v1554_v33 }
 0x560   : > { %v1559_v43 = vmul.f32 %v1555_v34, %v1462_v2  ;;  %v1556_v45 = vsub.f32 1.0, %v1552_v40 }
 0x561   : > { %v1565_v46 = vsub.f32 0.0, %v1561_v41  ;;  %1591 = vst [vmem:[%s626_s22 + $0x10] sm:$0xff] %v1561_v41  ;;  %v1562_v48 = vmul.f32 %v1558_v42, %v1477_v22 }
 0x562   : > { %v1563_v49 = vsub.f32 0.0, %v1559_v43  ;;  %1589 = vst [vmem:[%s626_s22] sm:$0xff] %v1559_v43  ;;  %v1560_v47 = vmul.f32 %v1556_v45, %v1466_v4 }
 0x563   : > { %v1575_v51 = vmul.f32 %v1887_v44, %v1565_v46  ;;  %v1566_v52 = vsub.f32 0.0, %v1562_v48  ;;  %1592 = vst [vmem:[%s626_s22 + $0x18] sm:$0xff] %v1562_v48 }
 0x564   : > { %v1573_v53 = vmul.f32 %v1887_v44, %v1563_v49  ;;  %v1564_v54 = vsub.f32 0.0, %v1560_v47  ;;  %1590 = vst [vmem:[%s626_s22 + $0x8] sm:$0xff] %v1560_v47 }
 0x565   : > { %v1581_v55 = vmul.f32 1.442695, %v1575_v51  ;;  %v1576_v56 = vmul.f32 %v1887_v44, %v1566_v52 }
 0x566   : > { %2372 = shalt.err (!%p2369_p7)
}
 0x567   : > { %s2373_s22 = scalar_lea.hbm %s2907_s3, 512  ;;  %s2377_s24 = scalar_lea.hbm %s3065_s14, 1024 }
 0x568   : > { %p2374_p8 = scmp.ne.s32.totalorder %s2907_s3, %s2373_s22  ;;  %p2378_p13 = scmp.lt.u32.totalorder %s2907_s3, %s3065_s14 }
 0x569   : > { %p2379_p5 = scmp.lt.u32.totalorder %s2377_s24, %s2373_s22  ;;  %p2381_p9 = scmp.lt.u32.totalorder %s2373_s22, %s2907_s3 }
 0x56a   : > { %p2375_p11 = pnand %p2374_p8, %p3066_p10 }
 0x56b   : > { %p2380_p6 = por %p2379_p5, %p2378_p13 }
 0x56c   : > { %p2376_p12 = pneg %p2375_p11 }
 0x56d   : > { %p2382_p1 = por %p2381_p9, %p2380_p6 }
 0x56f   : > { %p2383_p2 = pnand %p2382_p1, %p2376_p12 }
 0x571   : > { %2386 = shalt.err (!%p2383_p2)
}
 0x572   : > { %s2482_s21 = smov 128   ;;  %s2483_s25 = smov 8   ;;  %v1577_v50 = vmul.f32 1.442695, %v1573_v53  ;;  %v1574_v57 = vmul.f32 %v1887_v44, %v1564_v54  ;;  %2224 = vpow2.f32 %v1581_v55  ;;  %v1583_v58 = vmul.f32 1.442695, %v1576_v56 }
 0x573   : > { %2079 = dma.vmem_to_hbm [thread:$0]  (%p3066_p10), %s2909_s16, 512, %s2907_s3, %s1603_s26, %s2482_s21, %s2482_s21, %s2483_s25  }
 0x574   : > { %2226 = vpow2.f32 %v1577_v50  ;;  %v1579_v59 = vmul.f32 1.442695, %v1574_v57  ;;  %s619_s1 = scalar_lea.vmem [#allocation12], %s1827_s27  ;;  %s3067_s26 = sld [smem:[#allocation33_spill]] }
 0x575   : > { %2228 = vpow2.f32 %v1583_v58  ;;  %s1621_s23 = sshll.u32 %s619_s1, 4  ;;  %s1598_s27 = scalar_lea.sflag [#allocation4], %s2893_s0  ;;  %s2947_s23 = int_to_ptr.vmem [resolvable:$true] %s1621_s23 }
 0x576   : > { %2230 = vpow2.f32 %v1579_v59  ;;  %s2387_s30 = scalar_lea.vmem %s2947_s23, 512  ;;  %s2484_s28 = smov [#allocation12]  }
 0x577   : > { %p2388_p3 = scmp.ne.s32.totalorder %s2947_s23, %s2387_s30  ;;  %s2391_s24 = sshll.u32 %s2484_s28, 4  ;;  %s2392_s24 = int_to_ptr.vmem [resolvable:$false] %s2391_s24 }
 0x578   : > { %s2393_s29 = scalar_lea.vmem %s2392_s24, 1024  ;;  %p2394_p7 = scmp.lt.s32.totalorder %s2947_s23, %s2392_s24 }
 0x579   : > { %p2389_p4 = pnand %p2388_p3, %p3066_p10  ;;  %p2395_p8 = scmp.lt.s32.totalorder %s2393_s29, %s2387_s30 }
 0x57a   : > { %s3068_s22 = smov %s3067_s26  ;;  %s2945_s19 = scalar_lea.hbm %s3067_s26, %s1896_s15 }
 0x57b   : > { %p2390_p0 = pneg %p2389_p4  ;;  %p2396_p11 = por %p2395_p8, %p2394_p7 }
 0x57c   : > { %v2225_v60 = vpop.eup %2224 }
 0x57d   : > { %1587 = vst [vmem:[%s619_s1 + $0x10] sm:$0xff] %v2225_v60  ;;  %p2397_p12 = pnand %p2396_p11, %p2390_p0 }
 0x57e   : > { %v2227_v35 = vpop.eup %2226 }
 0x57f   : > { %v2229_v36 = vpop.eup %2228  ;;  %1585 = vst [vmem:[%s619_s1] sm:$0xff] %v2227_v35 }
 0x580   : > { %v2231_v61 = vpop.eup %2230  ;;  %1588 = vst [vmem:[%s619_s1 + $0x18] sm:$0xff] %v2229_v36 }
 0x581   : > { %1586 = vst [vmem:[%s619_s1 + $0x8] sm:$0xff] %v2231_v61 }
 0x582   : > { %2400 = shalt.err (!%p2397_p12)
}
 0x583   : > { %s2401_s15 = scalar_lea.hbm %s2945_s19, 512  ;;  %s2405_s16 = scalar_lea.hbm %s3068_s22, 1024 }
 0x584   : > { %p2402_p13 = scmp.ne.s32.totalorder %s2945_s19, %s2401_s15  ;;  %p2406_p9 = scmp.lt.u32.totalorder %s2945_s19, %s3068_s22 }
 0x585   : > { %p2407_p1 = scmp.lt.u32.totalorder %s2405_s16, %s2401_s15  ;;  %p2409_p3 = scmp.lt.u32.totalorder %s2401_s15, %s2945_s19 }
 0x586   : > { %p2403_p5 = pnand %p2402_p13, %p3066_p10 }
 0x587   : > { %p2408_p2 = por %p2407_p1, %p2406_p9 }
 0x588   : > { %p2404_p6 = pneg %p2403_p5 }
 0x589   : > { %p2410_p4 = por %p2409_p3, %p2408_p2 }
 0x58b   : > { %p2411_p0 = pnand %p2410_p4, %p2404_p6 }
 0x58d   : > { %2414 = shalt.err (!%p2411_p0)
}
 0x58e   : > { %2078 = dma.vmem_to_hbm [thread:$0]  (%p3066_p10), %s2947_s23, 512, %s2945_s19, %s1598_s27, %s2482_s21, %s2482_s21, %s2483_s25  }
 0x58f PF: > { %s3069_s30 = sld [smem:[#allocation24_spill]]  ;;  %s3070_s28 = sld [smem:[#allocation21_spill]] }
 0x590   : > { %s3071_s24 = sld [smem:[#allocation28_spill]] }
 0x595   : > { %p2115_p7 = scmp.ge.s32.totalorder %s3069_s30, 2  ;;  %s1656_s29 = sand.u32 1, %s3070_s28  }
 0x596   : > { %p3072_p8 = scmp.ne.s32.totalorder %s3071_s24, 0  ;;  %s1657_s15 = scalar_lea.sflag [#allocation4], %s1656_s29 }
 0x598   : > { %p2099_p11 = pnand %p2115_p7, %p3072_p8 }
 0x59a   : > { %2448 = dma.done.wait (!%p2099_p11), %s1657_s15, 512  }
 0x59b   : > { %2450 = vsyncadd (!%p2099_p11), %s1657_s15, 4294966784  ;;  %s1666_s20 = scalar_lea.sflag [#allocation14], %s1656_s29 }
 0x59c   : > { %2452 = dma.done.wait (!%p2099_p11), %s1666_s20, 512  }
 0x59d   : > { %2454 = vsyncadd (!%p2099_p11), %s1666_s20, 4294966784  ;;  %s3073_s27 = sld [smem:[#allocation25_spill]]  ;;  %s3074_s24 = sld [smem:[#allocation22_spill]] }
 0x59e   : > { %s3075_s25 = sld [smem:[#allocation23_spill]]  ;;  %s3076_s26 = sld [smem:[#allocation26_spill]] }
 0x5a3   : > { %p35_p10 = scmp.ge.s32.totalorder %s3073_s27, 4  }
 0x5a5   :  { %37 = sbr.rel (!%p35_p10) target bundleno = 16 (0x10), region = 166 }
 0x5ac   :  { %1679 = vsyncpa [#allocation3], 1 }
 0x5ad   :  { %1681 = vsyncpa [#allocation3 + $0x1], 1 }
 0x5ae   :  { %1682 = vsyncpa [#allocation8], 1 }
 0x5af   :  { %1683 = vsyncpa [#allocation11], 1 }
 0x5b0   :  { %1684 = vsyncpa [#allocation4], 1 }
 0x5b1   :  { %1686 = vsyncpa [#allocation4 + $0x1], 1 }
 0x5b2   :  { %1687 = vsyncpa [#allocation14], 1 }
 0x5b3   :  { %1689 = vsyncpa [#allocation14 + $0x1], 1 }
 0x5b4   :  { %1690 = vsyncpa [#allocation5], 1 }
 0x5b5   :  { %1692 = vsyncpa [#allocation5 + $0x1], 1 }

</bundles_post_ra>
